<compile_context>
chip_gen: v7x
topology: tpu7x:2x2x1
jax: 0.10.0
libtpu: 0.0.40
codegen_flags: <defaults>
</compile_context>

<pallas_src>
import numpy as np
import jax
import jax.numpy as jnp
from jax import lax
from jax.experimental import pallas as pl
from jax.experimental.pallas import tpu as pltpu


# --------------------------- fused edgeblock kernel ---------------------------
def _edgeblock_kernel(tg_ref, x_ref, r2_ref, cx_ref, cy_ref, mbig_ref,
                      bexp_ref, p1_ref, b1_ref, w2_ref, b2_ref, out_ref):
    r2 = r2_ref[...]           # (2H, Ht)   Sobel-row * resize-row selection, x|y stacked
    cx = cx_ref[...]           # (Wt, W)    Sobel-col(x) * resize-col selection
    cy = cy_ref[...]           # (Wt, W)    Sobel-col(y) * resize-col selection
    mbig = mbig_ref[...]       # (3W, C*Wop) merged conv_in bands (lane-padded)
    bexp = bexp_ref[...]       # (1, C*Wop)  conv_in bias expanded (0 in padded lanes)
    p1 = p1_ref[...]           # (C*Wop, mid) pooling + first 1x1 conv, folded
    b1 = b1_ref[...]           # (1, mid)
    w2 = w2_ref[...]           # (C, mid)
    b2 = b2_ref[...]           # (C, 1)

    H = r2.shape[0] // 2
    Ho = H - 2
    Bb = tg_ref.shape[0]

    # Unrolled over the Bb images of this grid step; the independent per-image
    # matmul chains interleave in the MXU pipeline (latency hiding).
    for b in range(Bb):
        a = tg_ref[b, 0]                                                # (Ht, Wt)
        # Sobel + nearest-resize, fully as matmuls (resize folded host-side).
        rows2 = jnp.dot(r2, a, preferred_element_type=jnp.float32)      # (2H, Wt)
        gx = jnp.dot(rows2[0:H], cx, preferred_element_type=jnp.float32)       # (H, W)
        gy = jnp.dot(rows2[H:2 * H], cy, preferred_element_type=jnp.float32)   # (H, W)
        mag = jnp.sqrt(gx * gx + gy * gy)                               # resized edge (H, W)

        # conv_in (3x3 valid, 1 -> C) as ONE merged banded matmul.
        A = jnp.concatenate([mag[0:Ho], mag[1:Ho + 1], mag[2:Ho + 2]], axis=1)  # (Ho, 3W)
        feat = jnp.maximum(
            jnp.dot(A, mbig, preferred_element_type=jnp.float32) + bexp, 0.0)   # (Ho, C*Wop)

        # AdaptiveAvgPool2d(1) + first 1x1 conv folded into a single matmul,
        # then a sublane reduce — no transpose of feat.
        hmat = jnp.dot(feat, p1, preferred_element_type=jnp.float32)    # (Ho, mid)
        h = jnp.maximum(jnp.sum(hmat, axis=0, keepdims=True) + b1, 0.0)  # (1, mid)

        # second 1x1 conv + sigmoid (vectorized, lane reduce -> channel column)
        y = jax.nn.sigmoid(jnp.sum(w2 * h, axis=1, keepdims=True) + b2)  # (C, 1)

        # scale x: lane-dense (C, H*W) multiply + full-lane store
        out_ref[b] = x_ref[b] * y


# --------------------------- one-time host-side prep --------------------------
def _default_batch_block(B):
    """Whole batch per step on 1-TC chips (v5e/v6e); >=2 steps on 2-TC v7x."""
    try:
        kind = jax.devices()[0].device_kind.lower()
        two_cores = ("v7" in kind) or ("7x" in kind)
    except Exception:
        two_cores = False
    if two_cores and B >= 2:
        bb = -(-B // 2)
        return bb if B % bb == 0 else 1
    return B


def prepare_edgeblock(params, x_shape, tg_shape, batch_block=None):
    """Build all static kernel operands ONCE (hoisted out of the forward path)."""
    B, C, H, W = (int(d) for d in x_shape)
    Ht, Wt = int(tg_shape[-2]), int(tg_shape[-1])
    Hs, Ws = Ht - 2, Wt - 2
    Ho, Wo = H - 2, W - 2

    w_in = np.asarray(params["w_in"], np.float32)   # (C, 1, 3, 3)
    b_in = np.asarray(params["b_in"], np.float32)   # (C,)
    w1 = np.asarray(params["w1"], np.float32)       # (mid, C, 1, 1)
    b1 = np.asarray(params["b1"], np.float32)       # (mid,)
    w2 = np.asarray(params["w2"], np.float32)       # (C, mid, 1, 1)
    b2 = np.asarray(params["b2"], np.float32)       # (C,)
    mid = w1.shape[0]

    # Separable Sobel: Gx = [2,4,2]^T x [1,0,-1], Gy = [2,0,-2]^T x [1,2,1]
    col_x = np.array([2.0, 4.0, 2.0], np.float32)
    row_x = np.array([1.0, 0.0, -1.0], np.float32)
    col_y = np.array([2.0, 0.0, -2.0], np.float32)
    row_y = np.array([1.0, 2.0, 1.0], np.float32)
    Rx = np.zeros((Hs, Ht), np.float32)
    Ry = np.zeros((Hs, Ht), np.float32)
    Cxm = np.zeros((Wt, Ws), np.float32)
    Cym = np.zeros((Wt, Ws), np.float32)
    for d in range(3):
        Rx[np.arange(Hs), np.arange(Hs) + d] = col_x[d]
        Ry[np.arange(Hs), np.arange(Hs) + d] = col_y[d]
        Cxm[np.arange(Ws) + d, np.arange(Ws)] = row_x[d]
        Cym[np.arange(Ws) + d, np.arange(Ws)] = row_y[d]

    # PyTorch 'nearest' resize: src = floor(dst * in / out) -> 0/1 selection matrices
    Rsel = np.zeros((H, Hs), np.float32)
    Rsel[np.arange(H), (np.arange(H) * Hs) // H] = 1.0
    Csel = np.zeros((Ws, W), np.float32)
    Csel[(np.arange(W) * Ws) // W, np.arange(W)] = 1.0

    # Fold resize into the separable Sobel matrices
    R2 = np.concatenate([Rsel @ Rx, Rsel @ Ry], axis=0)   # (2H, Ht)
    Cxp = Cxm @ Csel                                       # (Wt, W)
    Cyp = Cym @ Csel                                       # (Wt, W)

    # Pad Wo so the feature lane axis C*Wop is a multiple of 128 (full-vreg ops)
    Wop = Wo
    for cand in range(Wo, Wo + 129):
        if (C * cand) % 128 == 0:
            Wop = cand
            break
    CWp = C * Wop

    # Merged conv_in band matrix: Mbig[di*W + (j+dj), c*Wop + j] = w_in[c,0,di,dj]
    Mbig = np.zeros((3 * W, CWp), np.float32)
    cols = np.arange(C) * Wop
    for di in range(3):
        for dj in range(3):
            for j in range(Wo):
                Mbig[di * W + j + dj, cols + j] = w_in[:, 0, di, dj]

    # conv_in bias expanded over valid lanes; pooling + first 1x1 conv folded in P1
    bexp = np.zeros((1, CWp), np.float32)
    P1 = np.zeros((CWp, mid), np.float32)
    w1m = w1[:, :, 0, 0]                                   # (mid, C)
    for j in range(Wo):
        bexp[0, cols + j] = b_in
        P1[cols + j, :] = w1m.T / float(Ho * Wo)

    return dict(
        r2=jnp.asarray(R2), cx=jnp.asarray(Cxp), cy=jnp.asarray(Cyp),
        mbig=jnp.asarray(Mbig), bexp=jnp.asarray(bexp), p1=jnp.asarray(P1),
        b1=jnp.asarray(b1.reshape(1, mid)),
        w2=jnp.asarray(w2[:, :, 0, 0]),
        b2=jnp.asarray(b2.reshape(C, 1)),
        shapes=dict(C=C, H=H, W=W, Ht=Ht, Wt=Wt, mid=mid, CWp=CWp),
        batch_block=(batch_block if batch_block is not None
                     else _default_batch_block(B)),
    )


# ------------------------------ forward wrapper --------------------------------
def edgeblock_forward(x, tg, prep):
    B, C, H, W = x.shape
    Ht, Wt = tg.shape[-2], tg.shape[-1]
    HW = H * W
    s = prep["shapes"]
    mid, CWp = s["mid"], s["CWp"]

    Bb = prep["batch_block"]
    if B % Bb != 0:
        Bb = 1
    nsteps = B // Bb

    x_flat = x.reshape(B, C, HW)   # lane-dense layout for the kernel

    out_flat = pl.pallas_call(
        _edgeblock_kernel,
        out_shape=jax.ShapeDtypeStruct((B, C, HW), jnp.float32),
        grid=(nsteps,),
        in_specs=[
            pl.BlockSpec((Bb, 1, Ht, Wt), lambda i: (i, 0, 0, 0)),   # TG
            pl.BlockSpec((Bb, C, HW), lambda i: (i, 0, 0)),          # x (flattened)
            pl.BlockSpec((2 * H, Ht), lambda i: (0, 0)),             # R2 (sobel-row+resize)
            pl.BlockSpec((Wt, W), lambda i: (0, 0)),                 # Cx'
            pl.BlockSpec((Wt, W), lambda i: (0, 0)),                 # Cy'
            pl.BlockSpec((3 * W, CWp), lambda i: (0, 0)),            # merged conv bands
            pl.BlockSpec((1, CWp), lambda i: (0, 0)),                # conv bias (expanded)
            pl.BlockSpec((CWp, mid), lambda i: (0, 0)),              # pool + 1x1 conv fold
            pl.BlockSpec((1, mid), lambda i: (0, 0)),                # b1
            pl.BlockSpec((C, mid), lambda i: (0, 0)),                # w2
            pl.BlockSpec((C, 1), lambda i: (0, 0)),                  # b2
        ],
        out_specs=pl.BlockSpec((Bb, C, HW), lambda i: (i, 0, 0)),
        # 'parallel' so v7x's two TensorCores split the (>=2) grid steps; on 1-TC
        # chips the default batch_block makes this a single step (no loop overhead).
        compiler_params=pltpu.CompilerParams(dimension_semantics=("parallel",)),
    )(tg, x_flat, prep["r2"], prep["cx"], prep["cy"], prep["mbig"],
      prep["bexp"], prep["p1"], prep["b1"], prep["w2"], prep["b2"])
    return out_flat.reshape(B, C, H, W)


# ------------------------------ pure-JAX reference ----------------------------
def edgeblock_reference(x, tg, params):
    B, C, H, W = x.shape
    gx_k = jnp.array([[2., 0., -2.], [4., 0., -4.], [2., 0., -2.]], jnp.float32)
    gy_k = jnp.array([[2., 4., 2.], [0., 0., 0.], [-2., -4., -2.]], jnp.float32)
    gk = jnp.stack([gx_k, gy_k])[:, None]                       # (2,1,3,3)
    dn = ("NCHW", "OIHW", "NCHW")
    g = lax.conv_general_dilated(tg, gk, (1, 1), "VALID", dimension_numbers=dn)
    mag = jnp.sqrt(jnp.sum(g * g, axis=1, keepdims=True))       # (B,1,Hs,Ws)
    Hs, Ws = mag.shape[-2:]
    ri = (jnp.arange(H) * Hs) // H
    ci = (jnp.arange(W) * Ws) // W
    edge = mag[:, :, ri][:, :, :, ci]                           # nearest resize
    conv = lax.conv_general_dilated(edge, params["w_in"], (1, 1), "VALID",
                                    dimension_numbers=dn)
    feat = jax.nn.relu(conv + params["b_in"][None, :, None, None])
    pooled = jnp.mean(feat, axis=(2, 3), keepdims=True)
    h = jax.nn.relu(jnp.einsum("mc,bcij->bmij", params["w1"][:, :, 0, 0], pooled)
                    + params["b1"][None, :, None, None])
    y = jax.nn.sigmoid(jnp.einsum("cm,bmij->bcij", params["w2"][:, :, 0, 0], h)
                       + params["b2"][None, :, None, None])
    return x * y


if __name__ == "__main__":
    key = jax.random.PRNGKey(0)
    B, C, H, W = 2, 32, 16, 16
    Ht, Wt = 24, 24
    reduction = 16
    mid = C // reduction
    ks = jax.random.split(key, 8)
    x = jax.random.normal(ks[0], (B, C, H, W), jnp.float32)
    tg = jax.random.normal(ks[1], (B, 1, Ht, Wt), jnp.float32)
    params = {
        "w_in": 0.1 * jax.random.normal(ks[2], (C, 1, 3, 3), jnp.float32),
        "b_in": 0.1 * jax.random.normal(ks[3], (C,), jnp.float32),
        "w1":   0.1 * jax.random.normal(ks[4], (mid, C, 1, 1), jnp.float32),
        "b1":   0.1 * jax.random.normal(ks[5], (mid,), jnp.float32),
        "w2":   0.1 * jax.random.normal(ks[6], (C, mid, 1, 1), jnp.float32),
        "b2":   0.1 * jax.random.normal(ks[7], (C,), jnp.float32),
    }

    prep = prepare_edgeblock(params, x.shape, tg.shape)   # one-time, hoisted prep
    out = jax.block_until_ready(edgeblock_forward(x, tg, prep))
    ref = jax.block_until_ready(edgeblock_reference(x, tg, params))
    assert out.shape == (B, C, H, W)
    if not jnp.allclose(out, ref, atol=1e-3, rtol=1e-3):
        raise AssertionError("Pallas output mismatches pure-JAX reference")
    print("KERNEL_OK")
</pallas_src>

<mosaic_0001>
module attributes {stable_mosaic.version = 11 : i64} {
  func.func @_edgeblock_kernel(%arg0: i32, %arg1: memref<2x1x24x24xf32, #tpu.memory_space<vmem>>, %arg2: memref<2x32x256xf32, #tpu.memory_space<vmem>>, %arg3: memref<32x24xf32, #tpu.memory_space<vmem>>, %arg4: memref<24x16xf32, #tpu.memory_space<vmem>>, %arg5: memref<24x16xf32, #tpu.memory_space<vmem>>, %arg6: memref<48x512xf32, #tpu.memory_space<vmem>>, %arg7: memref<1x512xf32, #tpu.memory_space<vmem>>, %arg8: memref<512x2xf32, #tpu.memory_space<vmem>>, %arg9: memref<1x2xf32, #tpu.memory_space<vmem>>, %arg10: memref<32x2xf32, #tpu.memory_space<vmem>>, %arg11: memref<32x1xf32, #tpu.memory_space<vmem>>, %arg12: memref<2x32x256xf32, #tpu.memory_space<vmem>>) attributes {dimension_semantics = [#tpu.dimension_semantics<parallel>], iteration_bounds = array<i64: 1>, scalar_prefetch = 0 : i64, scratch_operands = 0 : i64, tpu.core_type = #tpu.core_type<tc>, window_params = [{transform_indices = @transform_0, window_bounds = array<i64: 2, 1, 24, 24>}, {transform_indices = @transform_1, window_bounds = array<i64: 2, 32, 256>}, {pipeline_mode = #tpu.pipeline_mode<synchronous>, transform_indices = @transform_2, window_bounds = array<i64: 32, 24>}, {pipeline_mode = #tpu.pipeline_mode<synchronous>, transform_indices = @transform_3, window_bounds = array<i64: 24, 16>}, {pipeline_mode = #tpu.pipeline_mode<synchronous>, transform_indices = @transform_4, window_bounds = array<i64: 24, 16>}, {pipeline_mode = #tpu.pipeline_mode<synchronous>, transform_indices = @transform_5, window_bounds = array<i64: 48, 512>}, {pipeline_mode = #tpu.pipeline_mode<synchronous>, transform_indices = @transform_6, window_bounds = array<i64: 1, 512>}, {pipeline_mode = #tpu.pipeline_mode<synchronous>, transform_indices = @transform_7, window_bounds = array<i64: 512, 2>}, {pipeline_mode = #tpu.pipeline_mode<synchronous>, transform_indices = @transform_8, window_bounds = array<i64: 1, 2>}, {pipeline_mode = #tpu.pipeline_mode<synchronous>, transform_indices = @transform_9, window_bounds = array<i64: 32, 2>}, {pipeline_mode = #tpu.pipeline_mode<synchronous>, transform_indices = @transform_10, window_bounds = array<i64: 32, 1>}, {transform_indices = @transform_11, window_bounds = array<i64: 2, 32, 256>}]} {
    %c0 = arith.constant 0 : index
    %c0_0 = arith.constant 0 : index
    %0 = vector.load %arg3[%c0, %c0_0] : memref<32x24xf32, #tpu.memory_space<vmem>>, vector<32x24xf32>
    %c0_1 = arith.constant 0 : index
    %c0_2 = arith.constant 0 : index
    %1 = vector.load %arg4[%c0_1, %c0_2] : memref<24x16xf32, #tpu.memory_space<vmem>>, vector<24x16xf32>
    %c0_3 = arith.constant 0 : index
    %c0_4 = arith.constant 0 : index
    %2 = vector.load %arg5[%c0_3, %c0_4] : memref<24x16xf32, #tpu.memory_space<vmem>>, vector<24x16xf32>
    %c0_5 = arith.constant 0 : index
    %c0_6 = arith.constant 0 : index
    %3 = vector.load %arg6[%c0_5, %c0_6] : memref<48x512xf32, #tpu.memory_space<vmem>>, vector<48x512xf32>
    %c0_7 = arith.constant 0 : index
    %c0_8 = arith.constant 0 : index
    %4 = vector.load %arg7[%c0_7, %c0_8] : memref<1x512xf32, #tpu.memory_space<vmem>>, vector<1x512xf32>
    %c0_9 = arith.constant 0 : index
    %c0_10 = arith.constant 0 : index
    %5 = vector.load %arg8[%c0_9, %c0_10] : memref<512x2xf32, #tpu.memory_space<vmem>>, vector<512x2xf32>
    %c0_11 = arith.constant 0 : index
    %c0_12 = arith.constant 0 : index
    %6 = vector.load %arg9[%c0_11, %c0_12] : memref<1x2xf32, #tpu.memory_space<vmem>>, vector<1x2xf32>
    %c0_13 = arith.constant 0 : index
    %c0_14 = arith.constant 0 : index
    %7 = vector.load %arg10[%c0_13, %c0_14] : memref<32x2xf32, #tpu.memory_space<vmem>>, vector<32x2xf32>
    %c0_15 = arith.constant 0 : index
    %c0_16 = arith.constant 0 : index
    %8 = vector.load %arg11[%c0_15, %c0_16] : memref<32x1xf32, #tpu.memory_space<vmem>>, vector<32x1xf32>
    %c0_17 = arith.constant 0 : index
    %c0_18 = arith.constant 0 : index
    %c0_19 = arith.constant 0 : index
    %c0_20 = arith.constant 0 : index
    %9 = vector.load %arg1[%c0_17, %c0_18, %c0_19, %c0_20] : memref<2x1x24x24xf32, #tpu.memory_space<vmem>>, vector<1x1x24x24xf32>
    %10 = vector.shape_cast %9 : vector<1x1x24x24xf32> to vector<24x24xf32>
    %cst = arith.constant dense<0.000000e+00> : vector<32x24xf32>
    %11 = tpu.matmul %0, %10, %cst {dimension_numbers = #tpu.dot_dimension_numbers<[1], [0], [0], [1], [0, 0, 1, 1], [], []>} : vector<32x24xf32>, vector<24x24xf32>, vector<32x24xf32> -> vector<32x24xf32>
    %12 = vector.extract_strided_slice %11 {offsets = [0, 0], sizes = [16, 24], strides = [1, 1]} : vector<32x24xf32> to vector<16x24xf32>
    %cst_21 = arith.constant dense<0.000000e+00> : vector<16x16xf32>
    %13 = tpu.matmul %12, %1, %cst_21 {dimension_numbers = #tpu.dot_dimension_numbers<[1], [0], [0], [1], [0, 0, 1, 1], [], []>} : vector<16x24xf32>, vector<24x16xf32>, vector<16x16xf32> -> vector<16x16xf32>
    %14 = vector.extract_strided_slice %11 {offsets = [16, 0], sizes = [16, 24], strides = [1, 1]} : vector<32x24xf32> to vector<16x24xf32>
    %cst_22 = arith.constant dense<0.000000e+00> : vector<16x16xf32>
    %15 = tpu.matmul %14, %2, %cst_22 {dimension_numbers = #tpu.dot_dimension_numbers<[1], [0], [0], [1], [0, 0, 1, 1], [], []>} : vector<16x24xf32>, vector<24x16xf32>, vector<16x16xf32> -> vector<16x16xf32>
    %16 = arith.mulf %13, %13 : vector<16x16xf32>
    %17 = arith.mulf %15, %15 : vector<16x16xf32>
    %18 = arith.addf %16, %17 : vector<16x16xf32>
    %19 = math.sqrt %18 : vector<16x16xf32>
    %20 = vector.extract_strided_slice %19 {offsets = [0, 0], sizes = [14, 16], strides = [1, 1]} : vector<16x16xf32> to vector<14x16xf32>
    %21 = vector.extract_strided_slice %19 {offsets = [1, 0], sizes = [14, 16], strides = [1, 1]} : vector<16x16xf32> to vector<14x16xf32>
    %22 = vector.extract_strided_slice %19 {offsets = [2, 0], sizes = [14, 16], strides = [1, 1]} : vector<16x16xf32> to vector<14x16xf32>
    %23 = tpu.concatenate %20, %21, %22 in 1 : vector<14x16xf32>, vector<14x16xf32>, vector<14x16xf32> -> vector<14x48xf32>
    %cst_23 = arith.constant dense<0.000000e+00> : vector<14x512xf32>
    %24 = tpu.matmul %23, %3, %cst_23 {dimension_numbers = #tpu.dot_dimension_numbers<[1], [0], [0], [1], [0, 0, 1, 1], [], []>} : vector<14x48xf32>, vector<48x512xf32>, vector<14x512xf32> -> vector<14x512xf32>
    %25 = vector.broadcast %4 : vector<1x512xf32> to vector<14x512xf32>
    %26 = arith.addf %24, %25 : vector<14x512xf32>
    %cst_24 = arith.constant 0.000000e+00 : f32
    %27 = vector.broadcast %cst_24 : f32 to vector<14x512xf32>
    %28 = arith.maximumf %26, %27 : vector<14x512xf32>
    %cst_25 = arith.constant dense<0.000000e+00> : vector<14x2xf32>
    %29 = tpu.matmul %28, %5, %cst_25 {dimension_numbers = #tpu.dot_dimension_numbers<[1], [0], [0], [1], [0, 0, 1, 1], [], []>} : vector<14x512xf32>, vector<512x2xf32>, vector<14x2xf32> -> vector<14x2xf32>
    %cst_26 = arith.constant dense<0.000000e+00> : vector<2xf32>
    %30 = vector.multi_reduction <add>, %29, %cst_26 [0] : vector<14x2xf32> to vector<2xf32>
    %31 = vector.shape_cast %30 : vector<2xf32> to vector<1x2xf32>
    %32 = arith.addf %31, %6 : vector<1x2xf32>
    %cst_27 = arith.constant 0.000000e+00 : f32
    %33 = vector.broadcast %cst_27 : f32 to vector<1x2xf32>
    %34 = arith.maximumf %32, %33 : vector<1x2xf32>
    %35 = vector.broadcast %34 : vector<1x2xf32> to vector<32x2xf32>
    %36 = arith.mulf %7, %35 : vector<32x2xf32>
    %cst_28 = arith.constant dense<0.000000e+00> : vector<32xf32>
    %37 = vector.multi_reduction <add>, %36, %cst_28 [1] : vector<32x2xf32> to vector<32xf32>
    %38 = vector.shape_cast %37 : vector<32xf32> to vector<32x1xf32>
    %39 = arith.addf %38, %8 : vector<32x1xf32>
    %40 = arith.negf %39 : vector<32x1xf32>
    %41 = math.exp %40 : vector<32x1xf32>
    %cst_29 = arith.constant 1.000000e+00 : f32
    %42 = vector.broadcast %cst_29 : f32 to vector<32x1xf32>
    %43 = arith.addf %42, %41 : vector<32x1xf32>
    %44 = arith.divf %42, %43 : vector<32x1xf32>
    %c0_30 = arith.constant 0 : index
    %c0_31 = arith.constant 0 : index
    %c0_32 = arith.constant 0 : index
    %45 = vector.load %arg2[%c0_30, %c0_31, %c0_32] : memref<2x32x256xf32, #tpu.memory_space<vmem>>, vector<1x32x256xf32>
    %46 = vector.shape_cast %45 : vector<1x32x256xf32> to vector<32x256xf32>
    %47 = vector.broadcast %44 : vector<32x1xf32> to vector<32x256xf32>
    %48 = arith.mulf %46, %47 : vector<32x256xf32>
    %c0_33 = arith.constant 0 : index
    %c0_34 = arith.constant 0 : index
    %c0_35 = arith.constant 0 : index
    %49 = vector.load %arg12[%c0_33, %c0_34, %c0_35] : memref<2x32x256xf32, #tpu.memory_space<vmem>>, vector<1x32x256xf32>
    %50 = vector.shape_cast %49 : vector<1x32x256xf32> to vector<32x256xf32>
    %51 = vector.shape_cast %48 : vector<32x256xf32> to vector<1x32x256xf32>
    tpu.vector_store %arg12[%c0_33, %c0_34, %c0_35], %51 {strides = array<i32>} : memref<2x32x256xf32, #tpu.memory_space<vmem>>, vector<1x32x256xf32>,
    %c1 = arith.constant 1 : index
    %c0_36 = arith.constant 0 : index
    %c0_37 = arith.constant 0 : index
    %c0_38 = arith.constant 0 : index
    %52 = vector.load %arg1[%c1, %c0_36, %c0_37, %c0_38] : memref<2x1x24x24xf32, #tpu.memory_space<vmem>>, vector<1x1x24x24xf32>
    %53 = vector.shape_cast %52 : vector<1x1x24x24xf32> to vector<24x24xf32>
    %cst_39 = arith.constant dense<0.000000e+00> : vector<32x24xf32>
    %54 = tpu.matmul %0, %53, %cst_39 {dimension_numbers = #tpu.dot_dimension_numbers<[1], [0], [0], [1], [0, 0, 1, 1], [], []>} : vector<32x24xf32>, vector<24x24xf32>, vector<32x24xf32> -> vector<32x24xf32>
    %55 = vector.extract_strided_slice %54 {offsets = [0, 0], sizes = [16, 24], strides = [1, 1]} : vector<32x24xf32> to vector<16x24xf32>
    %cst_40 = arith.constant dense<0.000000e+00> : vector<16x16xf32>
    %56 = tpu.matmul %55, %1, %cst_40 {dimension_numbers = #tpu.dot_dimension_numbers<[1], [0], [0], [1], [0, 0, 1, 1], [], []>} : vector<16x24xf32>, vector<24x16xf32>, vector<16x16xf32> -> vector<16x16xf32>
    %57 = vector.extract_strided_slice %54 {offsets = [16, 0], sizes = [16, 24], strides = [1, 1]} : vector<32x24xf32> to vector<16x24xf32>
    %cst_41 = arith.constant dense<0.000000e+00> : vector<16x16xf32>
    %58 = tpu.matmul %57, %2, %cst_41 {dimension_numbers = #tpu.dot_dimension_numbers<[1], [0], [0], [1], [0, 0, 1, 1], [], []>} : vector<16x24xf32>, vector<24x16xf32>, vector<16x16xf32> -> vector<16x16xf32>
    %59 = arith.mulf %56, %56 : vector<16x16xf32>
    %60 = arith.mulf %58, %58 : vector<16x16xf32>
    %61 = arith.addf %59, %60 : vector<16x16xf32>
    %62 = math.sqrt %61 : vector<16x16xf32>
    %63 = vector.extract_strided_slice %62 {offsets = [0, 0], sizes = [14, 16], strides = [1, 1]} : vector<16x16xf32> to vector<14x16xf32>
    %64 = vector.extract_strided_slice %62 {offsets = [1, 0], sizes = [14, 16], strides = [1, 1]} : vector<16x16xf32> to vector<14x16xf32>
    %65 = vector.extract_strided_slice %62 {offsets = [2, 0], sizes = [14, 16], strides = [1, 1]} : vector<16x16xf32> to vector<14x16xf32>
    %66 = tpu.concatenate %63, %64, %65 in 1 : vector<14x16xf32>, vector<14x16xf32>, vector<14x16xf32> -> vector<14x48xf32>
    %cst_42 = arith.constant dense<0.000000e+00> : vector<14x512xf32>
    %67 = tpu.matmul %66, %3, %cst_42 {dimension_numbers = #tpu.dot_dimension_numbers<[1], [0], [0], [1], [0, 0, 1, 1], [], []>} : vector<14x48xf32>, vector<48x512xf32>, vector<14x512xf32> -> vector<14x512xf32>
    %68 = vector.broadcast %4 : vector<1x512xf32> to vector<14x512xf32>
    %69 = arith.addf %67, %68 : vector<14x512xf32>
    %cst_43 = arith.constant 0.000000e+00 : f32
    %70 = vector.broadcast %cst_43 : f32 to vector<14x512xf32>
    %71 = arith.maximumf %69, %70 : vector<14x512xf32>
    %cst_44 = arith.constant dense<0.000000e+00> : vector<14x2xf32>
    %72 = tpu.matmul %71, %5, %cst_44 {dimension_numbers = #tpu.dot_dimension_numbers<[1], [0], [0], [1], [0, 0, 1, 1], [], []>} : vector<14x512xf32>, vector<512x2xf32>, vector<14x2xf32> -> vector<14x2xf32>
    %cst_45 = arith.constant dense<0.000000e+00> : vector<2xf32>
    %73 = vector.multi_reduction <add>, %72, %cst_45 [0] : vector<14x2xf32> to vector<2xf32>
    %74 = vector.shape_cast %73 : vector<2xf32> to vector<1x2xf32>
    %75 = arith.addf %74, %6 : vector<1x2xf32>
    %cst_46 = arith.constant 0.000000e+00 : f32
    %76 = vector.broadcast %cst_46 : f32 to vector<1x2xf32>
    %77 = arith.maximumf %75, %76 : vector<1x2xf32>
    %78 = vector.broadcast %77 : vector<1x2xf32> to vector<32x2xf32>
    %79 = arith.mulf %7, %78 : vector<32x2xf32>
    %cst_47 = arith.constant dense<0.000000e+00> : vector<32xf32>
    %80 = vector.multi_reduction <add>, %79, %cst_47 [1] : vector<32x2xf32> to vector<32xf32>
    %81 = vector.shape_cast %80 : vector<32xf32> to vector<32x1xf32>
    %82 = arith.addf %81, %8 : vector<32x1xf32>
    %83 = arith.negf %82 : vector<32x1xf32>
    %84 = math.exp %83 : vector<32x1xf32>
    %cst_48 = arith.constant 1.000000e+00 : f32
    %85 = vector.broadcast %cst_48 : f32 to vector<32x1xf32>
    %86 = arith.addf %85, %84 : vector<32x1xf32>
    %87 = arith.divf %85, %86 : vector<32x1xf32>
    %c1_49 = arith.constant 1 : index
    %c0_50 = arith.constant 0 : index
    %c0_51 = arith.constant 0 : index
    %88 = vector.load %arg2[%c1_49, %c0_50, %c0_51] : memref<2x32x256xf32, #tpu.memory_space<vmem>>, vector<1x32x256xf32>
    %89 = vector.shape_cast %88 : vector<1x32x256xf32> to vector<32x256xf32>
    %90 = vector.broadcast %87 : vector<32x1xf32> to vector<32x256xf32>
    %91 = arith.mulf %89, %90 : vector<32x256xf32>
    %c1_52 = arith.constant 1 : index
    %c0_53 = arith.constant 0 : index
    %c0_54 = arith.constant 0 : index
    %92 = vector.load %arg12[%c1_52, %c0_53, %c0_54] : memref<2x32x256xf32, #tpu.memory_space<vmem>>, vector<1x32x256xf32>
    %93 = vector.shape_cast %92 : vector<1x32x256xf32> to vector<32x256xf32>
    %94 = vector.shape_cast %91 : vector<32x256xf32> to vector<1x32x256xf32>
    tpu.vector_store %arg12[%c1_52, %c0_53, %c0_54], %94 {strides = array<i32>} : memref<2x32x256xf32, #tpu.memory_space<vmem>>, vector<1x32x256xf32>,
    return
  }
  func.func @transform_0(%arg0: i32) -> (i32, i32, i32, i32) {
    %c0_i32 = arith.constant 0 : i32
    %c0_i32_0 = arith.constant 0 : i32
    %c0_i32_1 = arith.constant 0 : i32
    %c0_i32_2 = arith.constant 0 : i32
    return %arg0, %c0_i32, %c0_i32_0, %c0_i32_1 : i32, i32, i32, i32
  }
  func.func @transform_1(%arg0: i32) -> (i32, i32, i32) {
    %c0_i32 = arith.constant 0 : i32
    %c0_i32_0 = arith.constant 0 : i32
    %c0_i32_1 = arith.constant 0 : i32
    return %arg0, %c0_i32, %c0_i32_0 : i32, i32, i32
  }
  func.func @transform_2(%arg0: i32) -> (i32, i32) {
    %c0_i32 = arith.constant 0 : i32
    %c0_i32_0 = arith.constant 0 : i32
    %c0_i32_1 = arith.constant 0 : i32
    return %c0_i32, %c0_i32_0 : i32, i32
  }
  func.func @transform_3(%arg0: i32) -> (i32, i32) {
    %c0_i32 = arith.constant 0 : i32
    %c0_i32_0 = arith.constant 0 : i32
    %c0_i32_1 = arith.constant 0 : i32
    return %c0_i32, %c0_i32_0 : i32, i32
  }
  func.func @transform_4(%arg0: i32) -> (i32, i32) {
    %c0_i32 = arith.constant 0 : i32
    %c0_i32_0 = arith.constant 0 : i32
    %c0_i32_1 = arith.constant 0 : i32
    return %c0_i32, %c0_i32_0 : i32, i32
  }
  func.func @transform_5(%arg0: i32) -> (i32, i32) {
    %c0_i32 = arith.constant 0 : i32
    %c0_i32_0 = arith.constant 0 : i32
    %c0_i32_1 = arith.constant 0 : i32
    return %c0_i32, %c0_i32_0 : i32, i32
  }
  func.func @transform_6(%arg0: i32) -> (i32, i32) {
    %c0_i32 = arith.constant 0 : i32
    %c0_i32_0 = arith.constant 0 : i32
    %c0_i32_1 = arith.constant 0 : i32
    return %c0_i32, %c0_i32_0 : i32, i32
  }
  func.func @transform_7(%arg0: i32) -> (i32, i32) {
    %c0_i32 = arith.constant 0 : i32
    %c0_i32_0 = arith.constant 0 : i32
    %c0_i32_1 = arith.constant 0 : i32
    return %c0_i32, %c0_i32_0 : i32, i32
  }
  func.func @transform_8(%arg0: i32) -> (i32, i32) {
    %c0_i32 = arith.constant 0 : i32
    %c0_i32_0 = arith.constant 0 : i32
    %c0_i32_1 = arith.constant 0 : i32
    return %c0_i32, %c0_i32_0 : i32, i32
  }
  func.func @transform_9(%arg0: i32) -> (i32, i32) {
    %c0_i32 = arith.constant 0 : i32
    %c0_i32_0 = arith.constant 0 : i32
    %c0_i32_1 = arith.constant 0 : i32
    return %c0_i32, %c0_i32_0 : i32, i32
  }
  func.func @transform_10(%arg0: i32) -> (i32, i32) {
    %c0_i32 = arith.constant 0 : i32
    %c0_i32_0 = arith.constant 0 : i32
    %c0_i32_1 = arith.constant 0 : i32
    return %c0_i32, %c0_i32_0 : i32, i32
  }
  func.func @transform_11(%arg0: i32) -> (i32, i32, i32) {
    %c0_i32 = arith.constant 0 : i32
    %c0_i32_0 = arith.constant 0 : i32
    %c0_i32_1 = arith.constant 0 : i32
    return %arg0, %c0_i32, %c0_i32_0 : i32, i32, i32
  }
}

</mosaic_0001>

<bundles_post_ra>
// kernel: tpu_custom_call.1
= control target key start
LH: loop header
LB: loop body
LE: loop exit
PB: predicated region body
PF: predicated region fallthrough
CT: control target
= control target key end

     0   :  { %vm150_vm0 = vcmask 195584   ;;  %s2996_s0 = inlined_call_operand.vmem [shape: f32[2,1,24,24], index: 0, kind: input, shape index: {}]   ;;  %s2997_s1 = inlined_call_operand.vmem [shape: f32[2,32,256], index: 1, kind: input, shape index: {}]   ;;  %s2998_s2 = inlined_call_operand.vmem [shape: f32[32,24], index: 2, kind: input, shape index: {}]   ;;  %s2999_s3 = inlined_call_operand.vmem [shape: f32[24,16], index: 3, kind: input, shape index: {}]   ;;  %s3000_s4 = inlined_call_operand.vmem [shape: f32[24,16], index: 4, kind: input, shape index: {}]   ;;  %s3001_s5 = inlined_call_operand.vmem [shape: f32[48,512], index: 5, kind: input, shape index: {}]   ;;  %s3002_s6 = inlined_call_operand.vmem [shape: f32[1,512], index: 6, kind: input, shape index: {}]   ;;  %s3003_s7 = inlined_call_operand.vmem [shape: f32[512,2], index: 7, kind: input, shape index: {}]   ;;  %s3004_s8 = inlined_call_operand.vmem [shape: f32[1,2], index: 8, kind: input, shape index: {}]   ;;  %s3005_s9 = inlined_call_operand.vmem [shape: f32[32,2], index: 9, kind: input, shape index: {}]   ;;  %s3006_s10 = inlined_call_operand.vmem [shape: f32[32,1], index: 10, kind: input, shape index: {}]   ;;  %s3007_s11 = inlined_call_operand.hbm [shape: f32[2,32,256], index: 11, kind: output, shape index: {}]  }
   0x1   :  { %v147_v0 = vld [vmem:[%s2996_s0] sm:$0xff]  ;;  %v148_v1 = vld [vmem:[%s2996_s0 + $0x8] sm:$0xff]  ;;  %v149_v4 = vld [vmem:[%s2996_s0 + $0x10] sm:$0xff] }
   0x2   :  { %v1926_v2 = vpack.c.bf16 %v148_v1, %v147_v0  ;;  %v2273_v3 = vld [vmem:[%s2998_s2] sm:$0xff]  ;;  %v44_v6 = vld [vmem:[%s2999_s3 + $0x8] sm:$0xff] }
   0x3   :  { %1872 = vmatprep.mubr.msk.f32.mxu0 %vm150_vm0, %v2273_v3  ;;  %v43_v5 = vld [vmem:[%s2999_s3] sm:$0xff] }
   0x4   :  { %1927 = vmatprep.subr.bf16.mxu0 %v1926_v2  ;;  %v2286_v7 = vpack.c.bf16 %v44_v6, %v43_v5 }
   0x5   :  { %16 = vsyncpa [#allocation3], 0  ;;  %1929 = vmatpush3.bf16.msra.mxu0 %v1926_v2  ;;  %v2292_v8 = vld [vmem:[%s2998_s2 + $0x8] sm:$0xff]  ;;  %v2298_v9 = vld [vmem:[%s2998_s2 + $0x10] sm:$0xff]  ;;  %vm432_vm5 = vcmask 1046528   ;;  %s2199_s13 = smov 16  }
   0x6   :  { %1870 = vmatprep.subr.mxu0 %v149_v4  ;;  %1931 = vmatprep.subr.bf16.mxu1 %v2286_v7  ;;  %v2307_v10 = vld [vmem:[%s2998_s2 + $0x18] sm:$0xff]  ;;  %v2314_v11 = vld [vmem:[%s2999_s3 + $0x10] sm:$0xff]  ;;  %v46_v12 = vld [vmem:[%s3000_s4] sm:$0xff]  ;;  %vm442_vm6 = vcmask 1045504   ;;  %s2200_s14 = smov 32   ;;  %vm452_vm7 = vcmask 130048  }
   0x7   :  { %1933 = vmatpush3.bf16.msra.mxu1 %v2286_v7  ;;  %v47_v13 = vld [vmem:[%s3000_s4 + $0x8] sm:$0xff]  ;;  %v2331_v17 = vld [vmem:[%s3000_s4 + $0x10] sm:$0xff]  ;;  %v52_v22 = vld [vmem:[%s3001_s5 + $0x18] sm:$0xff]  ;;  %vm479_vm8 = vcmask 392192   ;;  %vm455_vm9 = vcmask 261120   ;;  %vm798_vm10 = vcmask 15360  }
   0x8   :  { %1882 = vmatprep.subr.mxu1 %v2314_v11  ;;  %v2323_v14 = vpack.c.bf16 %v47_v13, %v46_v12  ;;  %v50_v20 = vld [vmem:[%s3001_s5 + $0x8] sm:$0xff]  ;;  %v56_v24 = vld [vmem:[%s3001_s5 + $0x38] sm:$0xff]  ;;  %v49_v25 = vld [vmem:[%s3001_s5] sm:$0xff]  ;;  %vm800_vm11 = vcmask 13312   ;;  %s2202_s28 = smov [#allocation2]  }
   0x9   :  { %1871 = vmatpush3.msra.mxu0 %v149_v4  ;;  %v54_v21 = vld [vmem:[%s3001_s5 + $0x28] sm:$0xff]  ;;  %v53_v26 = vld [vmem:[%s3001_s5 + $0x20] sm:$0xff]  ;;  %v2359_v27 = vpack.c.bf16 %v56_v24, %v52_v22  ;;  %v51_v29 = vld [vmem:[%s3001_s5 + $0x10] sm:$0xff]  ;;  %v3008_v4 = vmov 0.0   ;;  %s1626_s29 = sshll.u32 %s2202_s28, 4  ;;  %s1627_s29 = int_to_ptr.vmem [resolvable:$true] %s1626_s29 }
   0xa   :  { %1873 = vmatmul.mubr.msk.f32.vlgmr.msra.gmra.mrb[0].mxu0 %vm150_vm0, %v2292_v8  ;;  %v2348_v23 = vpack.c.bf16 %v54_v21, %v50_v20  ;;  %v2361_v28 = vpack.c.bf16 %v53_v26, %v49_v25  ;;  %v55_v30 = vld [vmem:[%s3001_s5 + $0x30] sm:$0xff]  ;;  %v58_v31 = vld [vmem:[%s3001_s5 + $0x48] sm:$0xff]  ;;  %v60_v34 = vld [vmem:[%s3001_s5 + $0x58] sm:$0xff]  ;;  %p2179_p1 = scmp.lt.s32.totalorder %s1627_s29, %s1627_s29 }
   0xb   :  { %1875 = vmatprep.mubr.msk.f32.mxu0 %vm150_vm0, %v2298_v9  ;;  %1883 = vmatpush3.msra.mxu1 %v2314_v11  ;;  %v2373_v32 = vpack.c.bf16 %v55_v30, %v51_v29  ;;  %v62_v33 = vld [vmem:[%s3001_s5 + $0x68] sm:$0xff]  ;;  %v64_v35 = vld [vmem:[%s3001_s5 + $0x78] sm:$0xff]  ;;  %v57_v48 = vld [vmem:[%s3001_s5 + $0x40] sm:$0xff] }
   0xc   :  { %1935 = vmatprep.subr.bf16.mxu1 %v2323_v14  ;;  %1939 = vmatprep.subr.bf16.mxu0 %v2348_v23  ;;  %v2386_v36 = vpack.c.bf16 %v62_v33, %v58_v31  ;;  %v2388_v37 = vpack.c.bf16 %v64_v35, %v60_v34  ;;  %v61_v49 = vld [vmem:[%s3001_s5 + $0x60] sm:$0xff]  ;;  %v59_v50 = vld [vmem:[%s3001_s5 + $0x50] sm:$0xff]  ;;  %v66_v54 = vld [vmem:[%s3001_s5 + $0x88] sm:$0xff] }
   0xd   :  { %1941 = vmatpush1.bf16.msra.mxu0 %v2361_v28  ;;  %v2402_v51 = vpack.c.bf16 %v61_v49, %v57_v48  ;;  %v63_v52 = vld [vmem:[%s3001_s5 + $0x70] sm:$0xff]  ;;  %v70_v55 = vld [vmem:[%s3001_s5 + $0xa8] sm:$0xff]  ;;  %v68_v56 = vld [vmem:[%s3001_s5 + $0x98] sm:$0xff] }
   0xe   :  { %1876 = vmatmul.mubr.msk.f32.gmra.mrb[2].mxu0 %vm150_vm0, %v2307_v10  ;;  %1943 = vmatprep.subr.bf16.mxu0 %v2386_v36  ;;  %v2407_v53 = vpack.c.bf16 %v63_v52, %v59_v50  ;;  %v2420_v57 = vpack.c.bf16 %v70_v55, %v66_v54  ;;  %v72_v58 = vld [vmem:[%s3001_s5 + $0xb8] sm:$0xff]  ;;  %v65_v59 = vld [vmem:[%s3001_s5 + $0x80] sm:$0xff]  ;;  %v67_v63 = vld [vmem:[%s3001_s5 + $0x90] sm:$0xff] }
   0xf   :  { %v69_v60 = vld [vmem:[%s3001_s5 + $0xa0] sm:$0xff]  ;;  %v2431_v61 = vpack.c.bf16 %v72_v58, %v68_v56  ;;  %v71_v0 = vld [vmem:[%s3001_s5 + $0xb0] sm:$0xff]  ;;  %550 = vmatprep.mubr.f32.mxu0 %v3008_v4  ;;  %v91_v24 = vld [vmem:[%s3003_s7 + $0x88] sm:$0xff] }
  0x10   :  { %v2433_v62 = vpack.c.bf16 %v69_v60, %v65_v59  ;;  %v2442_v1 = vpack.c.bf16 %v71_v0, %v67_v63  ;;  %v90_v22 = vld [vmem:[%s3003_s7 + $0x80] sm:$0xff]  ;;  %v123_v30 = vld [vmem:[%s3003_s7 + $0x188] sm:$0xff]  ;;  %v125_v48 = vld [vmem:[%s3003_s7 + $0x198] sm:$0xff] }
  0x11   :  { %1945 = vmatpush1.bf16.msra.mxu0 %v2402_v51  ;;  %v122_v25 = vld [vmem:[%s3003_s7 + $0x180] sm:$0xff]  ;;  %v2458_v29 = vpack.c.bf16 %v91_v24, %v90_v22  ;;  %v76_v55 = vld [vmem:[%s3003_s7 + $0x10] sm:$0xff]  ;;  %v77_v56 = vld [vmem:[%s3003_s7 + $0x18] sm:$0xff] }
  0x12   :  { %1947 = vmatprep.subr.bf16.mxu0 %v2420_v57  ;;  %v2464_v31 = vpack.c.bf16 %v123_v30, %v122_v25  ;;  %v108_v63 = vld [vmem:[%s3003_s7 + $0x110] sm:$0xff]  ;;  %v109_v0 = vld [vmem:[%s3003_s7 + $0x118] sm:$0xff]  ;;  %v110_v25 = vld [vmem:[%s3003_s7 + $0x120] sm:$0xff] }
  0x13   :  { %v96_v30 = vld [vmem:[%s3003_s7 + $0xb0] sm:$0xff] }
  0x15   :  { %1949 = vmatpush1.bf16.msra.mxu0 %v2433_v62 }
  0x16   :  { %1963 = vmatprep.subr.bf16.mxu0 %v2458_v29 }
  0xdd   :  { %v1874_v15 = vpop.f32.mrb[0].mxu0 }
  0xde   :  { %v229_v16 = vpop.f32.mrb[1].mxu0 }
  0xdf   :  { %1884 = vmatprep.mubr.msk.f32.mxu1 %vm150_vm0, %v229_v16 }
  0xe0   :  { %1885 = vmatmul.mubr.msk.f32.vlgmr.msra.gmra.mrb[0].mxu1 %vm150_vm0, %v1874_v15 }
  0xe1   :  { %1937 = vmatpush3.bf16.msra.mxu1 %v2323_v14  ;;  %v1877_v18 = vpop.f32.mrb[2].mxu0 }
  0xe2   :  { %v239_v19 = vpop.f32.mrb[3].mxu0  ;;  %1891 = vmatprep.subr.mxu1 %v2331_v17 }
  0xe3   :  { %1893 = vmatprep.mubr.msk.f32.mxu1 %vm150_vm0, %v239_v19 }
  0xe5   :  { %1892 = vmatpush3.msra.mxu1 %v2331_v17 }
  0xe6   :  { %1894 = vmatmul.mubr.msk.f32.vlgmr.msra.gmra.mrb[2].mxu1 %vm150_vm0, %v1877_v18  ;;  %1951 = vmatprep.subr.bf16.mxu1 %v2359_v27 }
  0xe7   :  { %1953 = vmatpush1.bf16.msra.mxu1 %v2373_v32  ;;  %627 = vmatprep.mubr.f32.mxu1 %v3008_v4 }
  0xe8   :  { %1955 = vmatprep.subr.bf16.mxu1 %v2388_v37 }
  0xeb   :  { %1957 = vmatpush1.bf16.msra.mxu1 %v2407_v53 }
  0xec   :  { %1959 = vmatprep.subr.bf16.mxu1 %v2431_v61 }
  0xef   :  { %1961 = vmatpush1.bf16.msra.mxu1 %v2442_v1 }
  0xf0   :  { %1995 = vmatprep.subr.bf16.mxu1 %v2464_v31 }
 0x1b3   :  { %v1886_v38 = vpop.f32.mrb[0].mxu1 }
 0x1b4   :  { %v320_v39 = vpop.f32.mrb[1].mxu1  ;;  %v411_v41 = vmul.f32 %v1886_v38, %v1886_v38 }
 0x1b5   :  { %v410_v44 = vmul.f32 %v320_v39, %v320_v39 }
 0x1b9   :  { %v1895_v40 = vpop.f32.mrb[2].mxu1 }
 0x1ba   :  { %v413_v42 = vmul.f32 %v1895_v40, %v1895_v40  ;;  %v401_v43 = vpop.f32.mrb[3].mxu1 }
 0x1bb   :  { %v412_v45 = vmul.f32 %v401_v43, %v401_v43  ;;  %v106_v43 = vld [vmem:[%s3003_s7 + $0x100] sm:$0xff] }
 0x1bc   :  { %v415_v46 = vadd.f32 %v413_v42, %v411_v41  ;;  %v74_v41 = vld [vmem:[%s3003_s7] sm:$0xff]  ;;  %v75_v42 = vld [vmem:[%s3003_s7 + $0x8] sm:$0xff] }
 0x1bd   :  { %v414_v47 = vadd.f32 %v412_v45, %v410_v44  ;;  %v107_v44 = vld [vmem:[%s3003_s7 + $0x108] sm:$0xff]  ;;  %v92_v45 = vld [vmem:[%s3003_s7 + $0x90] sm:$0xff]  ;;  %v2498_v52 = vpack.c.bf16 %v75_v42, %v74_v41  ;;  %v81_v41 = vld [vmem:[%s3003_s7 + $0x38] sm:$0xff] }
 0x1be   :  { %2134 = vrsqrt.f32 %v415_v46  ;;  %vm425_vm1 = vcmp.eq.f32.partialorder %v415_v46, inf  ;;  %v428_v12 = vand.u32 2147483648, %v415_v46  ;;  %vm427_vm2 = vcmp.eq.f32.partialorder %v415_v46, 0.0 }
 0x1bf   :  { %2136 = vrsqrt.f32 %v414_v47  ;;  %vm418_vm3 = vcmp.eq.f32.partialorder %v414_v47, inf  ;;  %v421_v16 = vand.u32 2147483648, %v414_v47  ;;  %vm420_vm4 = vcmp.eq.f32.partialorder %v414_v47, 0.0 }
 0x1c0   :  { %v2500_v54 = vpack.c.bf16 %v107_v44, %v106_v43  ;;  %v112_v44 = vld [vmem:[%s3003_s7 + $0x130] sm:$0xff] }
 0x1c8   :  { %v2135_v2 = vpop.eup %2134 }
 0x1c9   :  { %v2137_v5 = vpop.eup %2136  ;;  %v424_v6 = vmul.f32 %v2135_v2, %v415_v46  ;;  %v94_v2 = vld [vmem:[%s3003_s7 + $0xa0] sm:$0xff] }
 0x1ca   :  { %v417_v13 = vmul.f32 %v2137_v5, %v414_v47 }
 0x1cb   :  { %v426_v15 = vsel %vm425_vm1, %v415_v46, %v424_v6  ;;  %v93_v46 = vld [vmem:[%s3003_s7 + $0x98] sm:$0xff]  ;;  %v95_v6 = vld [vmem:[%s3003_s7 + $0xa8] sm:$0xff] }
 0x1cc   :  { %v429_v18 = vsel %vm427_vm2, %v428_v12, %v426_v15  ;;  %v419_v19 = vsel %vm418_vm3, %v414_v47, %v417_v13  ;;  %v124_v47 = vld [vmem:[%s3003_s7 + $0x190] sm:$0xff]  ;;  %v2509_v59 = vpack.c.bf16 %v93_v46, %v92_v45  ;;  %v126_v12 = vld [vmem:[%s3003_s7 + $0x1a0] sm:$0xff]  ;;  %v127_v13 = vld [vmem:[%s3003_s7 + $0x1a8] sm:$0xff] }
 0x1cd   :  { %v434_v20 = vrot.slane %v429_v18, 1  ;;  %v422_v21 = vsel %vm420_vm4, %v421_v16, %v419_v19  ;;  %v444_v34 = vrot.slane %v429_v18, 2  ;;  %v2511_v60 = vpack.c.bf16 %v125_v48, %v124_v47  ;;  %v113_v45 = vld [vmem:[%s3003_s7 + $0x138] sm:$0xff]  ;;  %v98_v46 = vld [vmem:[%s3003_s7 + $0xc0] sm:$0xff]  ;;  %v99_v47 = vld [vmem:[%s3003_s7 + $0xc8] sm:$0xff] }
 0x1ce   :  { %v433_v26 = vrot.slane %v422_v21, 1  ;;  %v443_v35 = vrot.slane %v422_v21, 2  ;;  %v2538_v16 = vpack.c.bf16 %v77_v56, %v76_v55  ;;  %v2540_v19 = vpack.c.bf16 %v109_v0, %v108_v63  ;;  %v130_v48 = vld [vmem:[%s3003_s7 + $0x1c0] sm:$0xff] }
 0x1cf   :  { %438 = vrot.lane.b32.xlu1 %v434_v20, %s2199_s13  ;;  %v2553_v24 = vpack.c.bf16 %v127_v13, %v126_v12  ;;  %v2615_v55 = vpack.c.bf16 %v113_v45, %v112_v44  ;;  %v82_v56 = vld [vmem:[%s3003_s7 + $0x40] sm:$0xff]  ;;  %v2625_v63 = vpack.c.bf16 %v99_v47, %v98_v46  ;;  %v101_v12 = vld [vmem:[%s3003_s7 + $0xd8] sm:$0xff]  ;;  %v132_v13 = vld [vmem:[%s3003_s7 + $0x1d0] sm:$0xff] }
 0x1d0   :  { %v435_v33 = vsel %vm432_vm5, %v433_v26, %v434_v20  ;;  %v445_v38 = vsel %vm442_vm6, %v443_v35, %v444_v34  ;;  %v78_v20 = vld [vmem:[%s3003_s7 + $0x20] sm:$0xff]  ;;  %v111_v26 = vld [vmem:[%s3003_s7 + $0x128] sm:$0xff]  ;;  %v129_v35 = vld [vmem:[%s3003_s7 + $0x1b8] sm:$0xff] }
 0x1d1   :  { %436 = vrot.lane.b32.xlu0 %v435_v33, %s2199_s13  ;;  %v97_v33 = vld [vmem:[%s3003_s7 + $0xb8] sm:$0xff]  ;;  %v135_v44 = vld [vmem:[%s3003_s7 + $0x1e8] sm:$0xff] }
 0x1d2   :  { %v2589_v42 = vpack.c.bf16 %v97_v33, %v96_v30  ;;  %v116_v33 = vld [vmem:[%s3003_s7 + $0x150] sm:$0xff] }
 0x1d3   :  { %448 = vrot.lane.b32.xlu1 %v444_v34, %s2200_s14  ;;  %v128_v34 = vld [vmem:[%s3003_s7 + $0x1b0] sm:$0xff] }
 0x1d4   :  { %v2591_v43 = vpack.c.bf16 %v129_v35, %v128_v34  ;;  %v117_v34 = vld [vmem:[%s3003_s7 + $0x158] sm:$0xff]  ;;  %v102_v35 = vld [vmem:[%s3003_s7 + $0xe0] sm:$0xff] }
 0x1d5   :  { %446 = vrot.lane.b32.xlu0 %v445_v38, %s2200_s14  ;;  %v2687_v46 = vpack.c.bf16 %v117_v34, %v116_v33  ;;  %v88_v33 = vld [vmem:[%s3003_s7 + $0x70] sm:$0xff]  ;;  %v89_v34 = vld [vmem:[%s3003_s7 + $0x78] sm:$0xff] }
 0x1d7   :  { %3025 = vst [vmem:[#allocation8_spill] sm:$0xff] %v2687_v46 }
 0x241   :  { %v439_v39 = vpop.permute.xlu1 %438 }
 0x242   :  { %v454_v15 = vsel %vm452_vm7, %v429_v18, %v439_v39  ;;  %v2551_v18 = vpack.c.bf16 %v95_v6, %v94_v2  ;;  %v2579_v39 = vpack.c.bf16 %v111_v26, %v110_v25  ;;  %v114_v2 = vld [vmem:[%s3003_s7 + $0x140] sm:$0xff]  ;;  %v100_v6 = vld [vmem:[%s3003_s7 + $0xd0] sm:$0xff]  ;;  %v85_v25 = vld [vmem:[%s3003_s7 + $0x58] sm:$0xff] }
 0x243   :  { %v437_v40 = vpop.permute.xlu0 %436  ;;  %v2661_v26 = vpack.c.bf16 %v101_v12, %v100_v6  ;;  %v104_v12 = vld [vmem:[%s3003_s7 + $0xf0] sm:$0xff] }
 0x244   :  { %v453_v49 = vsel %vm452_vm7, %v422_v21, %v437_v40  ;;  %v79_v21 = vld [vmem:[%s3003_s7 + $0x28] sm:$0xff]  ;;  %v80_v40 = vld [vmem:[%s3003_s7 + $0x30] sm:$0xff] }
 0x245   :  { %v449_v5 = vpop.permute.xlu1 %448  ;;  %v2577_v38 = vpack.c.bf16 %v79_v21, %v78_v20  ;;  %3022 = vst [vmem:[#allocation5_spill] sm:$0xff] %v2661_v26 }
 0x246   :  { %v457_v22 = vsel %vm455_vm9, %v454_v15, %v449_v5  ;;  %v115_v5 = vld [vmem:[%s3003_s7 + $0x148] sm:$0xff]  ;;  %v133_v15 = vld [vmem:[%s3003_s7 + $0x1d8] sm:$0xff] }
 0x247   :  { %v447_v50 = vpop.permute.xlu0 %446  ;;  %v2651_v21 = vpack.c.bf16 %v115_v5, %v114_v2  ;;  %v2663_v30 = vpack.c.bf16 %v133_v15, %v132_v13  ;;  %v119_v5 = vld [vmem:[%s3003_s7 + $0x168] sm:$0xff]  ;;  %v105_v13 = vld [vmem:[%s3003_s7 + $0xf8] sm:$0xff]  ;;  %v136_v15 = vld [vmem:[%s3003_s7 + $0x1f0] sm:$0xff] }
 0x248   :  { %v456_v58 = vsel %vm455_vm9, %v453_v49, %v447_v50  ;;  %v131_v49 = vld [vmem:[%s3003_s7 + $0x1c8] sm:$0xff]  ;;  %v2613_v50 = vpack.c.bf16 %v81_v41, %v80_v40  ;;  %v134_v41 = vld [vmem:[%s3003_s7 + $0x1e0] sm:$0xff] }
 0x249   :  { %1645 = vmatmul.mubr.msk.f32.vlgmr.msra.gmra.mrb[4].mxu0 %vm479_vm8, %v456_v58  ;;  %1647 = vmatmul.mubr.msk.f32.vlgmr.msra.gmra.mrb[4].mxu1 %vm479_vm8, %v456_v58  ;;  %v83_v58 = vld [vmem:[%s3003_s7 + $0x48] sm:$0xff]  ;;  %v2627_v0 = vpack.c.bf16 %v131_v49, %v130_v48  ;;  %3023 = vst [vmem:[#allocation6_spill] sm:$0xff] %v2663_v30  ;;  %v2693_v48 = vpack.c.bf16 %v135_v44, %v134_v41  ;;  %v86_v49 = vld [vmem:[%s3003_s7 + $0x60] sm:$0xff]  ;;  %v120_v41 = vld [vmem:[%s3003_s7 + $0x170] sm:$0xff] }
 0x24a   :  { %556 = vmatprep.mubr.f32.mxu0 %v3008_v4  ;;  %633 = vmatprep.mubr.f32.mxu1 %v3008_v4  ;;  %v2649_v20 = vpack.c.bf16 %v83_v58, %v82_v56  ;;  %v103_v40 = vld [vmem:[%s3003_s7 + $0xe8] sm:$0xff]  ;;  %v118_v58 = vld [vmem:[%s3003_s7 + $0x160] sm:$0xff]  ;;  %v121_v44 = vld [vmem:[%s3003_s7 + $0x178] sm:$0xff] }
 0x24b   :  { %1965 = vmatpush3.bf16.msra.mxu0 %v2498_v52  ;;  %1997 = vmatpush3.bf16.msra.mxu1 %v2500_v54  ;;  %v2691_v47 = vpack.c.bf16 %v103_v40, %v102_v35  ;;  %3027 = vst [vmem:[#allocation10_spill] sm:$0xff] %v2693_v48  ;;  %v87_v56 = vld [vmem:[%s3003_s7 + $0x68] sm:$0xff]  ;;  %v2713_v6 = vpack.c.bf16 %v119_v5, %v118_v58  ;;  %v1654_v58 = vld [vmem:[%s2996_s0 + $0x20] sm:$0xff] }
 0x24c   :  { %1967 = vmatprep.subr.bf16.mxu0 %v2509_v59  ;;  %1999 = vmatprep.subr.bf16.mxu1 %v2511_v60  ;;  %v2708_v2 = vpack.c.bf16 %v87_v56, %v86_v49  ;;  %v2739_v40 = vpack.c.bf16 %v89_v34, %v88_v33  ;;  %v2748_v49 = vpack.c.bf16 %v121_v44, %v120_v41  ;;  %v1653_v56 = vld [vmem:[%s2996_s0 + $0x18] sm:$0xff]  ;;  %v73_v33 = vld [vmem:[%s3002_s6] sm:$0xf] }
 0x24d   :  { %1646 = vmatmul.mubr.msk.f32.gmra.mrb[6].mxu0 %vm479_vm8, %v457_v22  ;;  %1648 = vmatmul.mubr.msk.f32.gmra.mrb[6].mxu1 %vm479_vm8, %v457_v22  ;;  %v84_v22 = vld [vmem:[%s3003_s7 + $0x50] sm:$0xff]  ;;  %3026 = vst [vmem:[#allocation9_spill] sm:$0xff] %v2691_v47  ;;  %3029 = vst [vmem:[#allocation12_spill] sm:$0xff] %v2713_v6  ;;  %v2026_v5 = vpack.c.bf16 %v1654_v58, %v1653_v56 }
 0x24e   :  { %v2685_v45 = vpack.c.bf16 %v85_v25, %v84_v22  ;;  %3028 = vst [vmem:[#allocation11_spill] sm:$0xff] %v2708_v2  ;;  %v2726_v22 = vpack.c.bf16 %v105_v13, %v104_v12  ;;  %v137_v25 = vld [vmem:[%s3003_s7 + $0x1f8] sm:$0xff]  ;;  %3032 = vst [vmem:[#allocation15_spill] sm:$0xff] %v2739_v40  ;;  %v459_v12 = vlaneseq  ;;  %s2174_s7 = scalar_lea.vmem %s1627_s29, 2048 }
 0x24f   :  { %1969 = vmatpush3.bf16.msra.mxu0 %v2538_v16  ;;  %2001 = vmatpush3.bf16.msra.mxu1 %v2540_v19  ;;  %v2737_v35 = vpack.c.bf16 %v137_v25, %v136_v15  ;;  %3033 = vst [vmem:[#allocation16_spill] sm:$0xff] %v2748_v49  ;;  %p2175_p0 = scmp.ne.s32.totalorder %s1627_s29, %s2174_s7  ;;  %p2180_p2 = scmp.lt.s32.totalorder %s2174_s7, %s2174_s7 }
 0x250   :  { %1971 = vmatprep.subr.bf16.mxu0 %v2551_v18  ;;  %2003 = vmatprep.subr.bf16.mxu1 %v2553_v24  ;;  %3024 = vst [vmem:[#allocation7_spill] sm:$0xff] %v2685_v45  ;;  %3030 = vst [vmem:[#allocation13_spill] sm:$0xff] %v2726_v22  ;;  %v460_v13 = vshrl.u32 %v459_v12, 7 }
 0x251   :  { %3031 = vst [vmem:[#allocation14_spill] sm:$0xff] %v2737_v35  ;;  %p2181_p3 = por %p2180_p2, %p2179_p1 }
 0x252   :  { %v2760_v15 = vsub.s32 0, %v460_v13  ;;  %v469_v25 = vsub.s32 2, %v460_v13  ;;  %v465_v34 = vsub.s32 1, %v460_v13  ;;  %v473_v41 = vsub.s32 3, %v460_v13 }
 0x253   :  { %1973 = vmatpush3.bf16.msra.mxu0 %v2577_v38  ;;  %2005 = vmatpush3.bf16.msra.mxu1 %v2579_v39  ;;  %p2182_p4 = pnand %p2181_p3, %p2175_p0 }
 0x254   :  { %1975 = vmatprep.subr.bf16.mxu0 %v2589_v42  ;;  %2007 = vmatprep.subr.bf16.mxu1 %v2591_v43  ;;  %v2766_v44 = vrot.slane %v73_v33, %v2760_v15  ;;  %v2768_v4 = vrot.slane %v73_v33, %v469_v25  ;;  %v2772_v56 = vrot.slane %v73_v33, %v473_v41 }
 0x257   :  { %1977 = vmatpush3.bf16.msra.mxu0 %v2613_v50  ;;  %2009 = vmatpush3.bf16.msra.mxu1 %v2615_v55 }
 0x258   :  { %1979 = vmatprep.subr.bf16.mxu0 %v2625_v63  ;;  %2011 = vmatprep.subr.bf16.mxu1 %v2627_v0 }
 0x25b   :  { %1981 = vmatpush3.bf16.msra.mxu0 %v2649_v20  ;;  %2013 = vmatpush3.bf16.msra.mxu1 %v2651_v21 }
 0x25c   :  { %1983 = vmatprep.subr.bf16.mxu0 %v2661_v26  ;;  %2015 = vmatprep.subr.bf16.mxu1 %v2663_v30 }
 0x25f   :  { %1985 = vmatpush3.bf16.msra.mxu0 %v2685_v45  ;;  %2017 = vmatpush3.bf16.msra.mxu1 %v2687_v46 }
 0x260   :  { %1987 = vmatprep.subr.bf16.mxu0 %v2691_v47  ;;  %2019 = vmatprep.subr.bf16.mxu1 %v2693_v48 }
 0x263   :  { %1989 = vmatpush3.bf16.msra.mxu0 %v2708_v2  ;;  %2021 = vmatpush3.bf16.msra.mxu1 %v2713_v6 }
 0x264   :  { %1991 = vmatprep.subr.bf16.mxu0 %v2726_v22  ;;  %2023 = vmatprep.subr.bf16.mxu1 %v2737_v35 }
 0x267   :  { %1993 = vmatpush3.bf16.msra.mxu0 %v2739_v40  ;;  %2025 = vmatpush3.bf16.msra.mxu1 %v2748_v49  ;;  %v2770_v49 = vrot.slane %v73_v33, %v465_v34 }
 0x268   :  { %2031 = vmatprep.subr.bf16.mxu1 %v2286_v7  ;;  %2027 = vmatprep.subr.bf16.mxu0 %v2026_v5 }
 0x31c   :  { %v552_v58 = vpop.f32.mrb[4].mxu0  ;;  %v629_v12 = vpop.f32.mrb[4].mxu1 }
 0x31d   :  { %v553_v40 = vadd.f32 %v552_v58, %v2766_v44  ;;  %v630_v35 = vadd.f32 %v629_v12, %v2768_v4  ;;  %v554_v22 = vpop.f32.mrb[5].mxu0  ;;  %v631_v6 = vpop.f32.mrb[5].mxu1 }
 0x31e   :  { %v555_v2 = vadd.f32 %v554_v22, %v2770_v49  ;;  %v632_v13 = vadd.f32 %v631_v6, %v2772_v56 }
 0x31f   :  { %v640_v34 = vmax.f32 %v553_v40, 0.0  ;;  %v642_v45 = vmax.f32 %v630_v35, 0.0 }
 0x320   :  { %v641_v48 = vmax.f32 %v555_v2, 0.0  ;;  %v643_v47 = vmax.f32 %v632_v13, 0.0  ;;  %v558_v25 = vpop.f32.mrb[6].mxu0  ;;  %v635_v46 = vpop.f32.mrb[6].mxu1  ;;  %v1655_v2 = vld [vmem:[%s2996_s0 + $0x28] sm:$0xff] }
 0x321   :  { %v559_v33 = vadd.f32 %v558_v25, %v2766_v44  ;;  %v636_v41 = vadd.f32 %v635_v46, %v2768_v4  ;;  %v560_v30 = vpop.f32.mrb[7].mxu0  ;;  %v637_v58 = vpop.f32.mrb[7].mxu1 }
 0x322   :  { %v561_v12 = vadd.f32 %v560_v30, %v2770_v49  ;;  %v638_v26 = vadd.f32 %v637_v58, %v2772_v56  ;;  %712 = vmatprep.mubr.f32.mxu0 %v641_v48  ;;  %787 = vmatprep.mubr.f32.mxu1 %v643_v47 }
 0x323   :  { %713 = vmatmul.mubr.f32.vlgmr.msra.gmra.mrb[8].mxu0 %v640_v34  ;;  %788 = vmatmul.mubr.f32.vlgmr.msra.gmra.mrb[8].mxu1 %v642_v45  ;;  %v644_v46 = vmax.f32 %v559_v33, 0.0  ;;  %v646_v35 = vmax.f32 %v636_v41, 0.0  ;;  %v3034_v33 = vmov 0.0  }
 0x324   :  { %v645_v6 = vmax.f32 %v561_v12, 0.0  ;;  %v647_v22 = vmax.f32 %v638_v26, 0.0  ;;  %2029 = vmatpush3.bf16.msra.mxu0 %v2026_v5  ;;  %2033 = vmatpush3.bf16.msra.mxu1 %v2286_v7 }
 0x325   :  { %1900 = vmatprep.subr.mxu0 %v1655_v2  ;;  %1912 = vmatprep.subr.mxu1 %v2314_v11 }
 0x326   :  { %717 = vmatprep.mubr.f32.mxu0 %v645_v6  ;;  %792 = vmatprep.mubr.f32.mxu1 %v647_v22 }
 0x327   :  { %718 = vmatmul.mubr.f32.gmra.mrb[10].mxu0 %v644_v46  ;;  %793 = vmatmul.mubr.f32.gmra.mrb[10].mxu1 %v646_v35 }
 0x328   :  { %1901 = vmatpush3.msra.mxu0 %v1655_v2  ;;  %1902 = vmatprep.mubr.msk.f32.mxu0 %vm150_vm0, %v2273_v3 }
 0x329   :  { %2035 = vmatprep.subr.bf16.mxu0 %v2323_v14  ;;  %1913 = vmatpush3.msra.mxu1 %v2314_v11 }
 0x32a   :  { %2039 = vmatprep.subr.bf16.mxu1 %v2348_v23 }
 0x32b   :  { %1903 = vmatmul.mubr.msk.f32.vlgmr.msra.gmra.mrb[12].mxu0 %vm150_vm0, %v2292_v8 }
 0x32c   :  { %1905 = vmatprep.mubr.msk.f32.mxu0 %vm150_vm0, %v2298_v9  ;;  %2037 = vmatpush3.bf16.msra.mxu0 %v2323_v14 }
 0x32d   :  { %1921 = vmatprep.subr.mxu0 %v2331_v17 }
 0x32f   :  { %1906 = vmatmul.mubr.msk.f32.gmra.mrb[14].mxu0 %vm150_vm0, %v2307_v10 }
 0x330   :  { %1922 = vmatpush3.msra.mxu0 %v2331_v17 }
 0x331   :  { %2051 = vmatprep.subr.bf16.mxu0 %v2359_v27 }
 0x3f6   :  { %v1729_v3 = vpop.f32.mrb[8].mxu0  ;;  %v1767_v7 = vpop.f32.mrb[8].mxu1 }
 0x3f7   :  { %v1730_v11 = vpop.f32.mrb[9].mxu0  ;;  %v1768_v23 = vpop.f32.mrb[9].mxu1 }
 0x3f8   :  { %v1731_v26 = vadd.f32 %v1730_v11, %v1729_v3  ;;  %v1769_v8 = vadd.f32 %v1768_v23, %v1767_v7 }
 0x3fa   :  { %v790_v30 = vadd.f32 %v1769_v8, %v1731_v26  ;;  %v1732_v45 = vpop.f32.mrb[10].mxu0  ;;  %v1770_v9 = vpop.f32.mrb[10].mxu1 }
 0x3fb   :  { %v1733_v47 = vpop.f32.mrb[11].mxu0  ;;  %v1771_v14 = vpop.f32.mrb[11].mxu1 }
 0x3fc   :  { %v1734_v48 = vadd.f32 %v1733_v47, %v1732_v45  ;;  %v1772_v40 = vadd.f32 %v1771_v14, %v1770_v9  ;;  %v799_v27 = vsel %vm798_vm10, %v790_v30, 0.0 }
 0x3fe   :  { %v795_v10 = vadd.f32 %v1772_v40, %v1734_v48  ;;  %v1904_v5 = vpop.f32.mrb[12].mxu0 }
 0x3ff   :  { %v973_v17 = vpop.f32.mrb[13].mxu0 }
 0x400   :  { %v801_v13 = vsel %vm800_vm11, %v795_v10, 0.0  ;;  %1914 = vmatprep.mubr.msk.f32.mxu1 %vm150_vm0, %v973_v17  ;;  %v2831_v10 = vld [vmem:[%s3004_s8] sm:$0x1] }
 0x401   :  { %v802_v25 = vadd.f32 %v801_v13, %v799_v27  ;;  %1915 = vmatmul.mubr.msk.f32.vlgmr.msra.gmra.mrb[12].mxu1 %vm150_vm0, %v1904_v5  ;;  %v2838_v13 = vld [vmem:[%s3005_s9] sm:$0xff] }
 0x402   :  { %v1907_v34 = vpop.f32.mrb[14].mxu0  ;;  %2041 = vmatpush1.bf16.msra.mxu1 %v2361_v28  ;;  %1268 = vmatprep.mubr.f32.mxu1 %v3034_v33 }
 0x403   :  { %v983_v41 = vpop.f32.mrb[15].mxu0  ;;  %2043 = vmatprep.subr.bf16.mxu1 %v2386_v36 }
 0x404   :  { %1923 = vmatprep.mubr.msk.f32.mxu0 %vm150_vm0, %v983_v41  ;;  %v2849_v41 = vld [vmem:[%s3005_s9 + $0x8] sm:$0xff] }
 0x405   :  { %1924 = vmatmul.mubr.msk.f32.vlgmr.msra.gmra.mrb[16].mxu0 %vm150_vm0, %v1907_v34  ;;  %v2844_v34 = vld [vmem:[%s3005_s9 + $0x10] sm:$0xff] }
 0x406   :  { %2053 = vmatpush1.bf16.msra.mxu0 %v2373_v32  ;;  %2045 = vmatpush1.bf16.msra.mxu1 %v2402_v51 }
 0x407   :  { %2055 = vmatprep.subr.bf16.mxu0 %v2388_v37  ;;  %2047 = vmatprep.subr.bf16.mxu1 %v2420_v57 }
 0x408   :  { %1345 = vmatprep.mubr.f32.mxu0 %v3034_v33 }
 0x40a   :  { %2057 = vmatpush1.bf16.msra.mxu0 %v2407_v53  ;;  %2049 = vmatpush1.bf16.msra.mxu1 %v2433_v62 }
 0x40b   :  { %2059 = vmatprep.subr.bf16.mxu0 %v2431_v61  ;;  %2063 = vmatprep.subr.bf16.mxu1 %v2458_v29  ;;  %v803_v29 = vrot.slane %v802_v25, 4 }
 0x40d   :  { %v804_v30 = vadd.f32 %v803_v29, %v802_v25 }
 0x40e   :  { %2061 = vmatpush1.bf16.msra.mxu0 %v2442_v1 }
 0x40f   :  { %2095 = vmatprep.subr.bf16.mxu0 %v2464_v31  ;;  %v805_v47 = vrot.slane %v804_v30, 2 }
 0x411   :  { %v806_v14 = vadd.f32 %v805_v47, %v804_v30 }
 0x413   :  { %v807_v48 = vrot.slane %v806_v14, 1 }
 0x415   :  { %v808_v40 = vadd.f32 %v807_v48, %v806_v14 }
 0x417   :  { %v809_v5 = vadd.f32 %v808_v40, %v2831_v10 }
 0x419   :  { %v810_v17 = vmax.f32 %v809_v5, 0.0 }
 0x41b   :  { %v814_v27 = vrot.slane %v810_v17, %v2760_v15 }
 0x41d   :  { %v815_v25 = vmul.f32 %v814_v27, %v2838_v13 }
 0x4d4   :  { %v1916_v28 = vpop.f32.mrb[12].mxu1 }
 0x4d5   :  { %v1064_v32 = vpop.f32.mrb[13].mxu1  ;;  %v1155_v37 = vmul.f32 %v1916_v28, %v1916_v28  ;;  %v819_v28 = vsel %vm798_vm10, %v815_v25, 0.0 }
 0x4d6   :  { %v1154_v58 = vmul.f32 %v1064_v32, %v1064_v32  ;;  %v817_v32 = vmul.f32 %v814_v27, %v2844_v34 }
 0x4d8   :  { %v1925_v36 = vpop.f32.mrb[16].mxu0 }
 0x4d9   :  { %v1157_v51 = vmul.f32 %v1925_v36, %v1925_v36  ;;  %v1145_v57 = vpop.f32.mrb[17].mxu0  ;;  %v816_v36 = vmul.f32 %v814_v27, %v2849_v41 }
 0x4da   :  { %v1156_v12 = vmul.f32 %v1145_v57, %v1145_v57 }
 0x4db   :  { %v1159_v2 = vadd.f32 %v1157_v51, %v1155_v37  ;;  %v2857_v37 = vld [vmem:[%s3005_s9 + $0x18] sm:$0xff]  ;;  %v825_v51 = vsel %vm798_vm10, %v817_v32, 0.0 }
 0x4dc   :  { %v1158_v53 = vadd.f32 %v1156_v12, %v1154_v58  ;;  %v818_v57 = vmul.f32 %v814_v27, %v2857_v37  ;;  %v822_v58 = vsel %vm798_vm10, %v816_v36, 0.0 }
 0x4dd   :  { %2138 = vrsqrt.f32 %v1159_v2  ;;  %vm1169_vm12 = vcmp.eq.f32.partialorder %v1159_v2, inf  ;;  %v1172_v1 = vand.u32 2147483648, %v1159_v2  ;;  %vm1171_vm14 = vcmp.eq.f32.partialorder %v1159_v2, 0.0 }
 0x4de   :  { %2140 = vrsqrt.f32 %v1158_v53  ;;  %vm1162_vm13 = vcmp.eq.f32.partialorder %v1158_v53, inf  ;;  %v1165_v31 = vand.u32 2147483648, %v1158_v53  ;;  %vm1164_vm15 = vcmp.eq.f32.partialorder %v1158_v53, 0.0 }
 0x4df   :  { %v828_v12 = vsel %vm798_vm10, %v818_v57, 0.0 }
 0x4e7   :  { %v2139_v62 = vpop.eup %2138 }
 0x4e8   :  { %v2141_v61 = vpop.eup %2140  ;;  %v1168_v6 = vmul.f32 %v2139_v62, %v1159_v2 }
 0x4e9   :  { %v1161_v22 = vmul.f32 %v2141_v61, %v1158_v53 }
 0x4ea   :  { %v1170_v46 = vsel %vm1169_vm12, %v1159_v2, %v1168_v6 }
 0x4eb   :  { %v1163_v35 = vsel %vm1162_vm13, %v1158_v53, %v1161_v22  ;;  %v1173_v3 = vsel %vm1171_vm14, %v1172_v1, %v1170_v46 }
 0x4ec   :  { %v1166_v7 = vsel %vm1164_vm15, %v1165_v31, %v1163_v35  ;;  %v1186_v11 = vrot.slane %v1173_v3, 2  ;;  %v1177_v23 = vrot.slane %v1173_v3, 1 }
 0x4ed   :  { %v1185_v26 = vrot.slane %v1166_v7, 2  ;;  %v1176_v8 = vrot.slane %v1166_v7, 1 }
 0x4ef   :  { %v1187_v45 = vsel %vm442_vm6, %v1185_v26, %v1186_v11  ;;  %v1178_v9 = vsel %vm432_vm5, %v1176_v8, %v1177_v23 }
 0x4f0   :  { %1188 = vrot.lane.b32.xlu1 %v1187_v45, %s2200_s14  ;;  %1179 = vrot.lane.b32.xlu0 %v1178_v9, %s2199_s13 }
 0x4f4   :  { %1190 = vrot.lane.b32.xlu1 %v1186_v11, %s2200_s14  ;;  %1181 = vrot.lane.b32.xlu0 %v1177_v23, %s2199_s13 }
 0x513   :  { %820 = vadd.xlane.f32.xlu0 %v819_v28 }
 0x517   :  { %826 = vadd.xlane.f32.xlu0 %v825_v51 }
 0x518   :  { %823 = vadd.xlane.f32.xlu1 %v822_v58 }
 0x51b   :  { %829 = vadd.xlane.f32.xlu0 %v828_v12 }
 0x562   :  { %v1189_v2 = vpop.permute.xlu1 %1188  ;;  %v1180_v53 = vpop.permute.xlu0 %1179 }
 0x563   :  { %v1194_v62 = vsel %vm452_vm7, %v1166_v7, %v1180_v53 }
 0x564   :  { %v1196_v61 = vsel %vm455_vm9, %v1194_v62, %v1189_v2 }
 0x565   :  { %1664 = vmatmul.mubr.msk.f32.vlgmr.msra.gmra.mrb[14].mxu1 %vm479_vm8, %v1196_v61  ;;  %1666 = vmatmul.mubr.msk.f32.vlgmr.msra.gmra.mrb[18].mxu0 %vm479_vm8, %v1196_v61 }
 0x566   :  { %v1191_v6 = vpop.permute.xlu1 %1190  ;;  %v1182_v29 = vpop.permute.xlu0 %1181  ;;  %1274 = vmatprep.mubr.f32.mxu1 %v3034_v33  ;;  %1351 = vmatprep.mubr.f32.mxu0 %v3034_v33 }
 0x567   :  { %v1195_v22 = vsel %vm452_vm7, %v1173_v3, %v1182_v29  ;;  %2065 = vmatpush3.bf16.msra.mxu1 %v2498_v52  ;;  %2097 = vmatpush3.bf16.msra.mxu0 %v2500_v54  ;;  %v3035_v52 = vld [vmem:[#allocation5_spill] sm:$0xff]  ;;  %v3036_v54 = vld [vmem:[#allocation6_spill] sm:$0xff] }
 0x568   :  { %v1197_v1 = vsel %vm455_vm9, %v1195_v22, %v1191_v6  ;;  %2067 = vmatprep.subr.bf16.mxu1 %v2509_v59  ;;  %2099 = vmatprep.subr.bf16.mxu0 %v2511_v60  ;;  %v3037_v59 = vld [vmem:[#allocation7_spill] sm:$0xff]  ;;  %v3038_v60 = vld [vmem:[#allocation8_spill] sm:$0xff] }
 0x569   :  { %1665 = vmatmul.mubr.msk.f32.gmra.mrb[16].mxu1 %vm479_vm8, %v1197_v1  ;;  %1667 = vmatmul.mubr.msk.f32.gmra.mrb[20].mxu0 %vm479_vm8, %v1197_v1  ;;  %v143_v1 = vld [vmem:[%s3006_s10] sm:$0xff] }
 0x56b   :  { %2069 = vmatpush3.bf16.msra.mxu1 %v2538_v16  ;;  %2101 = vmatpush3.bf16.msra.mxu0 %v2540_v19  ;;  %v3039_v16 = vld [vmem:[#allocation9_spill] sm:$0xff]  ;;  %v3040_v19 = vld [vmem:[#allocation10_spill] sm:$0xff] }
 0x56c   :  { %2071 = vmatprep.subr.bf16.mxu1 %v2551_v18  ;;  %2103 = vmatprep.subr.bf16.mxu0 %v2553_v24  ;;  %v3041_v18 = vld [vmem:[#allocation11_spill] sm:$0xff]  ;;  %v3042_v24 = vld [vmem:[#allocation12_spill] sm:$0xff] }
 0x56f   :  { %2073 = vmatpush3.bf16.msra.mxu1 %v2577_v38  ;;  %2105 = vmatpush3.bf16.msra.mxu0 %v2579_v39  ;;  %v3043_v38 = vld [vmem:[#allocation13_spill] sm:$0xff]  ;;  %v3044_v39 = vld [vmem:[#allocation14_spill] sm:$0xff] }
 0x570   :  { %2075 = vmatprep.subr.bf16.mxu1 %v2589_v42  ;;  %2107 = vmatprep.subr.bf16.mxu0 %v2591_v43  ;;  %v3045_v42 = vld [vmem:[#allocation15_spill] sm:$0xff]  ;;  %v3046_v43 = vld [vmem:[#allocation16_spill] sm:$0xff] }
 0x573   :  { %2077 = vmatpush3.bf16.msra.mxu1 %v2613_v50  ;;  %2109 = vmatpush3.bf16.msra.mxu0 %v2615_v55 }
 0x574   :  { %2079 = vmatprep.subr.bf16.mxu1 %v2625_v63  ;;  %2111 = vmatprep.subr.bf16.mxu0 %v2627_v0 }
 0x577   :  { %2081 = vmatpush3.bf16.msra.mxu1 %v2649_v20  ;;  %2113 = vmatpush3.bf16.msra.mxu0 %v2651_v21 }
 0x578   :  { %2083 = vmatprep.subr.bf16.mxu1 %v3035_v52  ;;  %2115 = vmatprep.subr.bf16.mxu0 %v3036_v54 }
 0x57b   :  { %2085 = vmatpush3.bf16.msra.mxu1 %v3037_v59  ;;  %2117 = vmatpush3.bf16.msra.mxu0 %v3038_v60 }
 0x57c   :  { %2087 = vmatprep.subr.bf16.mxu1 %v3039_v16  ;;  %2119 = vmatprep.subr.bf16.mxu0 %v3040_v19  ;;  %v145_v16 = vld [vmem:[%s3006_s10 + $0x10] sm:$0xff]  ;;  %v144_v19 = vld [vmem:[%s3006_s10 + $0x8] sm:$0xff] }
 0x57f   :  { %2089 = vmatpush3.bf16.msra.mxu1 %v3041_v18  ;;  %2121 = vmatpush3.bf16.msra.mxu0 %v3042_v24 }
 0x580   :  { %2091 = vmatprep.subr.bf16.mxu1 %v3043_v38  ;;  %2123 = vmatprep.subr.bf16.mxu0 %v3044_v39 }
 0x583   :  { %2093 = vmatpush3.bf16.msra.mxu1 %v3045_v42  ;;  %2125 = vmatpush3.bf16.msra.mxu0 %v3046_v43 }
 0x5a0   :  { %v821_v6 = vpop.xlane.xlu0 %820 }
 0x5a1   :  { %v831_v59 = vadd.f32 %v821_v6, %v143_v1  ;;  %v861_v6 = vld [vmem:[%s2997_s1 + $0x10] sm:$0xff] }
 0x5a3   :  { %v1649_v38 = vmul.f32 -1.442695, %v831_v59 }
 0x5a4   :  { %v827_v54 = vpop.xlane.xlu0 %826 }
 0x5a5   :  { %v824_v18 = vpop.xlane.xlu1 %823  ;;  %v833_v39 = vadd.f32 %v827_v54, %v145_v16  ;;  %2142 = vpow2.f32 %v1649_v38 }
 0x5a6   :  { %v832_v43 = vadd.f32 %v824_v18, %v144_v19 }
 0x638   :  { %v1270_v50 = vpop.f32.mrb[14].mxu1  ;;  %v1347_v55 = vpop.f32.mrb[18].mxu0 }
 0x639   :  { %v1271_v63 = vadd.f32 %v1270_v50, %v2766_v44  ;;  %v1348_v0 = vadd.f32 %v1347_v55, %v2768_v4  ;;  %v1272_v20 = vpop.f32.mrb[15].mxu1  ;;  %v1349_v21 = vpop.f32.mrb[19].mxu0  ;;  %v146_v50 = vld [vmem:[%s3006_s10 + $0x18] sm:$0xff] }
 0x63a   :  { %v1273_v33 = vadd.f32 %v1272_v20, %v2770_v49  ;;  %v1350_v31 = vadd.f32 %v1349_v21, %v2772_v56  ;;  %v830_v55 = vpop.xlane.xlu0 %829 }
 0x63b   :  { %v1358_v11 = vmax.f32 %v1271_v63, 0.0  ;;  %v1360_v23 = vmax.f32 %v1348_v0, 0.0  ;;  %v1651_v0 = vmul.f32 -1.442695, %v833_v39  ;;  %v834_v20 = vadd.f32 %v830_v55, %v146_v50 }
 0x63c   :  { %v1359_v46 = vmax.f32 %v1273_v33, 0.0  ;;  %v1361_v35 = vmax.f32 %v1350_v31, 0.0  ;;  %v1276_v3 = vpop.f32.mrb[16].mxu1  ;;  %v1353_v7 = vpop.f32.mrb[20].mxu0  ;;  %v1650_v33 = vmul.f32 -1.442695, %v832_v43 }
 0x63d   :  { %v1277_v26 = vadd.f32 %v1276_v3, %v2766_v44  ;;  %v1354_v8 = vadd.f32 %v1353_v7, %v2768_v4  ;;  %v1278_v30 = vpop.f32.mrb[17].mxu1  ;;  %v1355_v45 = vpop.f32.mrb[21].mxu0  ;;  %v2201_v44 = vmov 0   ;;  %2144 = vpow2.f32 %v1651_v0 }
 0x63e   :  { %v1279_v9 = vadd.f32 %v1278_v30, %v2770_v49  ;;  %v1356_v47 = vadd.f32 %v1355_v45, %v2772_v56  ;;  %1430 = vmatprep.mubr.f32.mxu1 %v1359_v46  ;;  %1505 = vmatprep.mubr.f32.mxu0 %v1361_v35  ;;  %v1652_v46 = vmul.f32 -1.442695, %v834_v20  ;;  %2146 = vpow2.f32 %v1650_v33 }
 0x63f   :  { %1431 = vmatmul.mubr.f32.vlgmr.msra.gmra.mrb[18].mxu1 %v1358_v11  ;;  %1506 = vmatmul.mubr.f32.vlgmr.msra.gmra.mrb[22].mxu0 %v1360_v23  ;;  %v1362_v40 = vmax.f32 %v1277_v26, 0.0  ;;  %v1364_v5 = vmax.f32 %v1354_v8, 0.0  ;;  %v2143_v26 = vpop.eup %2142 }
 0x640   :  { %v1363_v14 = vmax.f32 %v1279_v9, 0.0  ;;  %v1365_v48 = vmax.f32 %v1356_v47, 0.0  ;;  %2132 = vset.pattern.permute.xlu1 %v2201_v44  ;;  %2133 = vset.pattern.permute.xlu0 %v2201_v44  ;;  %2148 = vpow2.f32 %v1652_v46 }
 0x642   :  { %1435 = vmatprep.mubr.f32.mxu1 %v1363_v14  ;;  %1510 = vmatprep.mubr.f32.mxu0 %v1365_v48 }
 0x643   :  { %1436 = vmatmul.mubr.f32.gmra.mrb[20].mxu1 %v1362_v40  ;;  %1511 = vmatmul.mubr.f32.gmra.mrb[24].mxu0 %v1364_v5 }
 0x712   :  { %v1822_v4 = vpop.f32.mrb[18].mxu1  ;;  %v1860_v17 = vpop.f32.mrb[22].mxu0 }
 0x713   :  { %v1823_v49 = vpop.f32.mrb[19].mxu1  ;;  %v1861_v27 = vpop.f32.mrb[23].mxu0 }
 0x714   :  { %v1824_v56 = vadd.f32 %v1823_v49, %v1822_v4  ;;  %v1862_v25 = vadd.f32 %v1861_v27, %v1860_v17 }
 0x716   :  { %v1508_v28 = vadd.f32 %v1862_v25, %v1824_v56  ;;  %v1825_v32 = vpop.f32.mrb[20].mxu1  ;;  %v1863_v36 = vpop.f32.mrb[24].mxu0 }
 0x717   :  { %v1826_v51 = vpop.f32.mrb[21].mxu1  ;;  %v1864_v57 = vpop.f32.mrb[25].mxu0 }
 0x718   :  { %v1827_v58 = vadd.f32 %v1826_v51, %v1825_v32  ;;  %v1865_v12 = vadd.f32 %v1864_v57, %v1863_v36  ;;  %v1516_v53 = vsel %vm798_vm10, %v1508_v28, 0.0  ;;  %v859_v36 = vld [vmem:[%s2997_s1] sm:$0xff]  ;;  %v860_v51 = vld [vmem:[%s2997_s1 + $0x8] sm:$0xff] }
 0x71a   :  { %v1513_v2 = vadd.f32 %v1865_v12, %v1827_v58 }
 0x71c   :  { %v1517_v62 = vsel %vm800_vm11, %v1513_v2, 0.0 }
 0x71d   :  { %v1518_v61 = vadd.f32 %v1517_v62, %v1516_v53  ;;  %v863_v62 = vld [vmem:[%s2997_s1 + $0x20] sm:$0xff] }
 0x71f   :  { %v1519_v29 = vrot.slane %v1518_v61, 4 }
 0x721   :  { %v1520_v22 = vadd.f32 %v1519_v29, %v1518_v61  ;;  %v864_v61 = vld [vmem:[%s2997_s1 + $0x28] sm:$0xff]  ;;  %v862_v29 = vld [vmem:[%s2997_s1 + $0x18] sm:$0xff] }
 0x723   :  { %v1521_v52 = vrot.slane %v1520_v22, 2 }
 0x725   :  { %v1522_v60 = vadd.f32 %v1521_v52, %v1520_v22 }
 0x727   :  { %v1523_v24 = vrot.slane %v1522_v60, 1 }
 0x729   :  { %v1524_v42 = vadd.f32 %v1523_v24, %v1522_v60 }
 0x72b   :  { %v1525_v63 = vadd.f32 %v1524_v42, %v2831_v10 }
 0x72d   :  { %v1526_v21 = vmax.f32 %v1525_v63, 0.0 }
 0x72f   :  { %v1530_v31 = vrot.slane %v1526_v21, %v2760_v15 }
 0x731   :  { %v1531_v35 = vmul.f32 %v1530_v31, %v2838_v13  ;;  %v1532_v3 = vmul.f32 %v1530_v31, %v2849_v41  ;;  %v1533_v10 = vmul.f32 %v1530_v31, %v2844_v34  ;;  %v1534_v23 = vmul.f32 %v1530_v31, %v2857_v37  ;;  %v2145_v41 = vpop.eup %2144 }
 0x732   :  { %v847_v13 = vadd.f32 1.0, %v2143_v26  ;;  %v2147_v30 = vpop.eup %2146  ;;  %v849_v45 = vadd.f32 1.0, %v2145_v41  ;;  %v1675_v26 = vld [vmem:[%s2997_s1 + $0x58] sm:$0xff]  ;;  %v1676_v41 = vld [vmem:[%s2997_s1 + $0x60] sm:$0xff] }
 0x733   :  { %v1535_v7 = vsel %vm798_vm10, %v1531_v35, 0.0  ;;  %v1538_v11 = vsel %vm798_vm10, %v1532_v3, 0.0  ;;  %v1541_v15 = vsel %vm798_vm10, %v1533_v10, 0.0  ;;  %v1544_v8 = vsel %vm798_vm10, %v1534_v23, 0.0  ;;  %v2149_v9 = vpop.eup %2148  ;;  %v1672_v35 = vld [vmem:[%s2997_s1 + $0x40] sm:$0xff]  ;;  %v1673_v3 = vld [vmem:[%s2997_s1 + $0x48] sm:$0xff] }
 0x734   :  { %1536 = vadd.xlane.f32.xlu1 %v1535_v7  ;;  %1539 = vadd.xlane.f32.xlu0 %v1538_v11  ;;  %2150 = vrcp.f32 %v847_v13  ;;  %v848_v47 = vadd.f32 1.0, %v2147_v30  ;;  %v850_v34 = vadd.f32 1.0, %v2149_v9  ;;  %v1674_v23 = vld [vmem:[%s2997_s1 + $0x50] sm:$0xff]  ;;  %v1677_v30 = vld [vmem:[%s2997_s1 + $0x68] sm:$0xff] }
 0x735   :  { %2152 = vrcp.f32 %v849_v45 }
 0x736   :  { %2154 = vrcp.f32 %v848_v47 }
 0x737   :  { %2156 = vrcp.f32 %v850_v34  ;;  %v1678_v34 = vld [vmem:[%s2997_s1 + $0x70] sm:$0xff] }
 0x738   :  { %1542 = vadd.xlane.f32.xlu1 %v1541_v15  ;;  %1545 = vadd.xlane.f32.xlu0 %v1544_v8 }
 0x73e   :  { %v2151_v37 = vpop.eup %2150 }
 0x73f   :  { %v2153_v14 = vpop.eup %2152 }
 0x740   :  { %v2155_v48 = vpop.eup %2154 }
 0x741   :  { %v2157_v40 = vpop.eup %2156 }
 0x749   :  { %869 = vperm.xlu1 %2132, %v2151_v37   ;;  %v1679_v37 = vld [vmem:[%s2997_s1 + $0x78] sm:$0xff] }
 0x74d   :  { %879 = vperm.xlu1 %2132, %v2153_v14  }
 0x74e   :  { %874 = vperm.xlu0 %2133, %v2155_v48  }
 0x751   :  { %884 = vperm.xlu1 %2132, %v2157_v40  }
 0x7c1   :  { %v1537_v5 = vpop.xlane.xlu1 %1536  ;;  %v1540_v44 = vpop.xlane.xlu0 %1539 }
 0x7c2   :  { %v1547_v4 = vadd.f32 %v1537_v5, %v143_v1  ;;  %v1548_v17 = vadd.f32 %v1540_v44, %v144_v19  ;;  %v866_v19 = vld [vmem:[%s2997_s1 + $0x38] sm:$0xff] }
 0x7c4   :  { %v1668_v49 = vmul.f32 -1.442695, %v1547_v4  ;;  %v1669_v27 = vmul.f32 -1.442695, %v1548_v17 }
 0x7c5   :  { %v1543_v56 = vpop.xlane.xlu1 %1542  ;;  %v1546_v25 = vpop.xlane.xlu0 %1545 }
 0x7c6   :  { %2158 = vpow2.f32 %v1668_v49  ;;  %v1549_v28 = vadd.f32 %v1543_v56, %v145_v16  ;;  %v1550_v32 = vadd.f32 %v1546_v25, %v146_v50  ;;  %v865_v16 = vld [vmem:[%s2997_s1 + $0x30] sm:$0xff] }
 0x7c7   :  { %2160 = vpow2.f32 %v1669_v27 }
 0x7c8   :  { %v1670_v57 = vmul.f32 -1.442695, %v1549_v28  ;;  %v1671_v58 = vmul.f32 -1.442695, %v1550_v32 }
 0x7c9   :  { %v870_v12 = vpop.permute.xlu1 %869 }
 0x7ca   :  { %2162 = vpow2.f32 %v1670_v57  ;;  %v887_v2 = vmul.f32 %v870_v12, %v859_v36  ;;  %v888_v53 = vmul.f32 %v870_v12, %v860_v51 }
 0x7cb   :  { %2164 = vpow2.f32 %v1671_v58 }
 0x7cc   :  { %895 = vst [vmem:[#allocation2] sm:$0xff] %v887_v2  ;;  %896 = vst [vmem:[#allocation2 + $0x8] sm:$0xff] %v888_v53 }
 0x7cd   :  { %v880_v22 = vpop.permute.xlu1 %879  ;;  %v875_v1 = vpop.permute.xlu0 %874 }
 0x7ce   :  { %v891_v52 = vmul.f32 %v880_v22, %v863_v62  ;;  %v892_v54 = vmul.f32 %v880_v22, %v864_v61  ;;  %v889_v59 = vmul.f32 %v875_v1, %v861_v6  ;;  %v890_v60 = vmul.f32 %v875_v1, %v862_v29 }
 0x7d0   :  { %v2159_v18 = vpop.eup %2158  ;;  %899 = vst [vmem:[#allocation2 + $0x20] sm:$0xff] %v891_v52  ;;  %900 = vst [vmem:[#allocation2 + $0x28] sm:$0xff] %v892_v54 }
 0x7d1   :  { %897 = vst [vmem:[#allocation2 + $0x10] sm:$0xff] %v889_v59  ;;  %898 = vst [vmem:[#allocation2 + $0x18] sm:$0xff] %v890_v60  ;;  %v2161_v24 = vpop.eup %2160  ;;  %v1563_v38 = vadd.f32 1.0, %v2159_v18  ;;  %v885_v39 = vpop.permute.xlu1 %884 }
 0x7d2   :  { %v893_v42 = vmul.f32 %v885_v39, %v865_v16  ;;  %v894_v43 = vmul.f32 %v885_v39, %v866_v19  ;;  %v1564_v50 = vadd.f32 1.0, %v2161_v24 }
 0x7d3   :  { %2166 = vrcp.f32 %v1563_v38 }
 0x7d4   :  { %v2163_v55 = vpop.eup %2162  ;;  %901 = vst [vmem:[#allocation2 + $0x30] sm:$0xff] %v893_v42  ;;  %902 = vst [vmem:[#allocation2 + $0x38] sm:$0xff] %v894_v43  ;;  %2168 = vrcp.f32 %v1564_v50 }
 0x7d5   :  { %v2165_v63 = vpop.eup %2164  ;;  %v1565_v0 = vadd.f32 1.0, %v2163_v55 }
 0x7d6   :  { %v1566_v20 = vadd.f32 1.0, %v2165_v63 }
 0x7d7   :  { %2170 = vrcp.f32 %v1565_v0 }
 0x7d8   :  { %2172 = vrcp.f32 %v1566_v20 }
 0x7dd   :  { %v2167_v21 = vpop.eup %2166 }
 0x7de   :  { %1586 = vperm.xlu1 %2132, %v2167_v21   ;;  %v2169_v33 = vpop.eup %2168 }
 0x7e1   :  { %v2171_v31 = vpop.eup %2170 }
 0x7e2   :  { %1591 = vperm.xlu1 %2132, %v2169_v33   ;;  %v2173_v46 = vpop.eup %2172 }
 0x7e6   :  { %1596 = vperm.xlu1 %2132, %v2171_v31  }
 0x7ea   :  { %1601 = vperm.xlu1 %2132, %v2173_v46  }
 0x85d   :  { %v1587_v7 = vpop.permute.xlu1 %1586 }
 0x85e   :  { %v1604_v11 = vmul.f32 %v1672_v35, %v1587_v7  ;;  %v1605_v10 = vmul.f32 %v1673_v3, %v1587_v7 }
 0x860   :  { %1613 = vst [vmem:[#allocation2 + $0x40] sm:$0xff] %v1604_v11  ;;  %1614 = vst [vmem:[#allocation2 + $0x48] sm:$0xff] %v1605_v10 }
 0x861   :  { %v1592_v15 = vpop.permute.xlu1 %1591 }
 0x862   :  { %v1606_v8 = vmul.f32 %v1674_v23, %v1592_v15  ;;  %v1607_v13 = vmul.f32 %v1675_v26, %v1592_v15 }
 0x864   :  { %1615 = vst [vmem:[#allocation2 + $0x50] sm:$0xff] %v1606_v8  ;;  %1616 = vst [vmem:[#allocation2 + $0x58] sm:$0xff] %v1607_v13 }
 0x865   :  { %v1597_v45 = vpop.permute.xlu1 %1596 }
 0x866   :  { %v1608_v9 = vmul.f32 %v1676_v41, %v1597_v45  ;;  %v1609_v47 = vmul.f32 %v1677_v30, %v1597_v45 }
 0x868   :  { %1617 = vst [vmem:[#allocation2 + $0x60] sm:$0xff] %v1608_v9  ;;  %1618 = vst [vmem:[#allocation2 + $0x68] sm:$0xff] %v1609_v47 }
 0x869   :  { %v1602_v14 = vpop.permute.xlu1 %1601 }
 0x86a   :  { %v1610_v48 = vmul.f32 %v1678_v34, %v1602_v14  ;;  %v1611_v40 = vmul.f32 %v1679_v37, %v1602_v14 }
 0x86c   :  { %1619 = vst [vmem:[#allocation2 + $0x70] sm:$0xff] %v1610_v48  ;;  %1620 = vst [vmem:[#allocation2 + $0x78] sm:$0xff] %v1611_v40 }
 0x86d   :  { %2185 = shalt.err (!%p2182_p4)
}
 0x86e   :  { %s2186_s1 = scalar_lea.hbm %s3007_s11, 2048 }
 0x86f   :  { %p2187_p5 = scmp.ne.s32.totalorder %s3007_s11, %s2186_s1  ;;  %p2190_p6 = scmp.lt.u32.totalorder %s2186_s1, %s3007_s11 }
 0x871   :  { %p2192_p7 = pnand %p2190_p6, %p2187_p5 }
 0x873   :  { %2195 = shalt.err (!%p2192_p7)
}
 0x874   :  { %s2203_s17 = smov 256  }
 0x875   :  { %1632 = dma.vmem_to_hbm [thread:$0]  %s1627_s29, 2048, %s3007_s11, [#allocation3], %s2203_s17, %s2203_s17, %s2199_s13  }
 0x876   :  { %2196 = dma.done.wait [#allocation3], 2048  }
 0x877   :  { %2197 = vsyncadd [#allocation3], 4294965248 }
 0x878   :  { %1636 = vsyncpa [#allocation3], 1 }

</bundles_post_ra>
